<compile_context>
chip_gen: v5e
topology: v5e:2x2
jax: 0.10.0
libtpu: 0.0.40
codegen_flags: <defaults>
</compile_context>

<pallas_src>
import functools

import numpy as np

import jax
import jax.numpy as jnp
from jax.experimental import pallas as pl
from jax.experimental.pallas import tpu as pltpu


# ----------------------------------------------------------------------------
# Small helpers
# ----------------------------------------------------------------------------
def _round_up(v, m):
    return (v + m - 1) // m * m


def _pad_and_tile(dim, target, mult):
    """Pad `dim` up to a multiple of `mult`, pick tile = min(target, padded),
    then re-round padded so the tile divides it exactly."""
    padded = _round_up(dim, mult)
    tile = min(target, padded)
    padded = _round_up(padded, tile)
    return padded, tile


def _pad2d(x, rows, cols, dtype):
    out = jnp.zeros((rows, cols), dtype)
    return out.at[: x.shape[0], : x.shape[1]].set(x.astype(dtype))


# ----------------------------------------------------------------------------
# Kernel 1: tiled fused  relu( (X @ W) * scale + bias )   (1x1 convs)
# ----------------------------------------------------------------------------
def _matmul_bn_relu_kernel(x_ref, w_ref, s_ref, b_ref, o_ref, acc_ref):
    @pl.when(pl.program_id(2) == 0)
    def _init():
        acc_ref[...] = jnp.zeros_like(acc_ref)

    acc_ref[...] += jnp.dot(x_ref[...], w_ref[...],
                            preferred_element_type=jnp.float32)

    @pl.when(pl.program_id(2) == pl.num_programs(2) - 1)
    def _finalize():
        y = acc_ref[...] * s_ref[...] + b_ref[...]     # folded BatchNorm
        o_ref[...] = jnp.maximum(y, 0.0).astype(o_ref.dtype)


def fused_matmul_bn_relu(x, w, scale, bias, *,
                         tm_target=256, tn_target=512, tk_target=2048,
                         out_dtype=jnp.bfloat16):
    """relu((x @ w) * scale + bias); x:(M,K), w:(K,N), scale/bias:(N,)."""
    M, K = x.shape
    K2, N = w.shape
    assert K == K2
    M_pad, tm = _pad_and_tile(M, tm_target, 16)
    K_pad, tk = _pad_and_tile(K, tk_target, 128)
    N_pad, tn = _pad_and_tile(N, tn_target, 128)

    xp = _pad2d(x, M_pad, K_pad, jnp.bfloat16)          # bf16 into the MXU
    wp = _pad2d(w, K_pad, N_pad, jnp.bfloat16)
    sp = _pad2d(scale.reshape(1, N), 1, N_pad, jnp.float32)
    bp = _pad2d(bias.reshape(1, N), 1, N_pad, jnp.float32)

    grid = (M_pad // tm, N_pad // tn, K_pad // tk)

    vmem_need = (2 * (tm * tk * 2 + tk * tn * 2 + tm * tn * 2)
                 + tm * tn * 4 + 4 * tn * 4)
    vmem_limit = int(min(max(2 * vmem_need, 32 * 1024 * 1024), 64 * 1024 * 1024))

    out = pl.pallas_call(
        _matmul_bn_relu_kernel,
        out_shape=jax.ShapeDtypeStruct((M_pad, N_pad), out_dtype),
        grid=grid,
        in_specs=[
            pl.BlockSpec((tm, tk), lambda i, j, k: (i, k)),
            pl.BlockSpec((tk, tn), lambda i, j, k: (k, j)),
            pl.BlockSpec((1, tn), lambda i, j, k: (0, j)),
            pl.BlockSpec((1, tn), lambda i, j, k: (0, j)),
        ],
        out_specs=pl.BlockSpec((tm, tn), lambda i, j, k: (i, j)),
        scratch_shapes=[pltpu.VMEM((tm, tn), jnp.float32)],
        compiler_params=pltpu.CompilerParams(
            dimension_semantics=("parallel", "parallel", "arbitrary"),
            vmem_limit_bytes=vmem_limit),
        cost_estimate=pl.CostEstimate(
            flops=2 * M_pad * N_pad * K_pad,
            transcendentals=0,
            bytes_accessed=int(2 * M_pad * K_pad * (N_pad // tn)
                               + 2 * K_pad * N_pad * (M_pad // tm)
                               + 2 * M_pad * N_pad)),
    )(xp, wp, sp, bp)
    # TODO(synk): slice below copies when (M, N) != (M_pad, N_pad).
    return out[:M, :N]


# ----------------------------------------------------------------------------
# Kernel 2: 3x3 conv (pad=1) + folded BN + ReLU, NHWC, whole-image M blocks
# ----------------------------------------------------------------------------
def _conv3x3_bn_relu_kernel(x_ref, w_ref, s_ref, b_ref, o_ref, acc_ref,
                            *, wq, m_tile):
    # x_ref: (m_tile, tk) bf16 -- one whole zero-padded image, rows flattened as
    #        m = yp*wq + q.  All 9 taps are shifted views of this one tile.
    # w_ref: (3, 3, tk, tn) bf16 -- all (dy, dx) taps for this K/N slab; its
    #        block index never changes with the image axis, so it stays
    #        VMEM-resident instead of being re-streamed per image row.
    k = pl.program_id(2)

    @pl.when(k == 0)
    def _init():
        acc_ref[...] = jnp.zeros_like(acc_ref)

    x = x_ref[...]                               # (m_tile, tk) bf16
    x32 = x.astype(jnp.float32)                  # shifted taps built in 32-bit
    acc = acc_ref[...]
    for dy in range(3):
        for dx in range(3):
            s = (dy - 1) * wq + (dx - 1)         # flat source offset of tap
            if s == 0:
                tap = x                          # centre tap: no roll, no cast
            else:
                # tap[m] = x[m + s]; wrap-around only lands in discarded
                # border rows/columns (guaranteed by Wq >= W+2 and the 1-row
                # guard ring), so it never pollutes kept outputs.
                tap = pltpu.roll(x32, (-s) % m_tile, axis=0).astype(x.dtype)
            acc = acc + jnp.dot(tap, w_ref[dy, dx],
                                preferred_element_type=jnp.float32)
    acc_ref[...] = acc

    @pl.when(k == pl.num_programs(2) - 1)
    def _finalize():
        y = acc_ref[...] * s_ref[...] + b_ref[...]    # folded BatchNorm
        o_ref[...] = jnp.maximum(y, 0.0).astype(o_ref.dtype)


def conv3x3_bn_relu_nhwc(x_nhwc, w_oihw, scale, bias, *,
                         tn_target=512, tk_target=512,
                         out_dtype=jnp.bfloat16):
    """3x3 conv (stride 1, pad 1, no bias) + BN + ReLU in NHWC.

    One grid step = one whole padded image x one (K, N) slab; the 9 taps come
    from in-kernel rolls of the flattened (row*Wq + col) axis.  tk_target is
    sized for the v7x 64 MiB VMEM budget; v5e/v6e (128 MiB) can raise it."""
    B, H, W, C = x_nhwc.shape
    N = w_oihw.shape[0]
    assert w_oihw.shape[1:] == (C, 3, 3)

    Hp = H + 2
    Wq = _round_up(W + 2, 16)                   # >= W+2 so dx shifts never wrap
    M_tile = Hp * Wq                            # one flattened padded image
    K_pad, tk = _pad_and_tile(C, tk_target, 128)
    N_pad, tn = _pad_and_tile(N, tn_target, 128)
    num_kc = K_pad // tk
    num_n = N_pad // tn

    # Zero-padded NHWC input; 1-row/1-col guard ring carries the conv padding.
    xp = jnp.zeros((B, Hp, Wq, K_pad), jnp.bfloat16)
    xp = xp.at[:, 1:H + 1, 1:W + 1, :C].set(x_nhwc.astype(jnp.bfloat16))
    xr = xp.reshape(B * M_tile, K_pad)

    # weights (N, C, 3, 3) -> (ky, kx, C, N), zero-padded to (3, 3, K_pad, N_pad)
    wt = jnp.transpose(w_oihw, (2, 3, 1, 0)).astype(jnp.bfloat16)
    wpad = jnp.zeros((3, 3, K_pad, N_pad), jnp.bfloat16).at[:, :, :C, :N].set(wt)
    sp = _pad2d(scale.reshape(1, N), 1, N_pad, jnp.float32)
    bp = _pad2d(bias.reshape(1, N), 1, N_pad, jnp.float32)

    grid = (num_n, B, num_kc)                   # reduction (K slab) innermost

    kernel = functools.partial(_conv3x3_bn_relu_kernel, wq=Wq, m_tile=M_tile)

    vmem_need = (2 * (M_tile * tk * 2) + 2 * (9 * tk * tn * 2)
                 + 2 * (M_tile * tn * 2) + M_tile * tn * 4
                 + 3 * M_tile * tk * 4)
    vmem_limit = int(min(max(2 * vmem_need, 32 * 1024 * 1024), 64 * 1024 * 1024))

    out = pl.pallas_call(
        kernel,
        out_shape=jax.ShapeDtypeStruct((B * M_tile, N_pad), out_dtype),
        grid=grid,
        in_specs=[
            pl.BlockSpec((M_tile, tk), lambda j, i, k: (i, k)),
            # Weight index_map is independent of the image axis i (and of k
            # when num_kc == 1) -> DMA'd once per N tile, not per image row.
            pl.BlockSpec((3, 3, tk, tn), lambda j, i, k: (0, 0, k, j)),
            pl.BlockSpec((1, tn), lambda j, i, k: (0, j)),
            pl.BlockSpec((1, tn), lambda j, i, k: (0, j)),
        ],
        out_specs=pl.BlockSpec((M_tile, tn), lambda j, i, k: (i, j)),
        scratch_shapes=[pltpu.VMEM((M_tile, tn), jnp.float32)],
        compiler_params=pltpu.CompilerParams(
            dimension_semantics=("parallel", "parallel", "arbitrary"),
            vmem_limit_bytes=vmem_limit),
        cost_estimate=pl.CostEstimate(
            flops=2 * 9 * B * M_tile * K_pad * N_pad,
            transcendentals=0,
            bytes_accessed=int(2 * B * M_tile * K_pad * num_n
                               + 2 * 9 * K_pad * N_pad * (1 if num_kc == 1 else B)
                               + 2 * B * M_tile * N_pad)),
    )(xr, wpad, sp, bp)

    # drop the padding ring / extra width / padded channels
    # TODO(synk): crop slice materializes a copy; could be fused into the store.
    out = out.reshape(B, Hp, Wq, N_pad)[:, 1:H + 1, 1:W + 1, :N]
    return out


# ----------------------------------------------------------------------------
# Pure-JAX glue (exact PyTorch pooling / bilinear semantics), NHWC layout
# ----------------------------------------------------------------------------
def adaptive_avg_pool2d_nhwc(x, out_size):
    """Exact PyTorch AdaptiveAvgPool2d windows. x: (B, H, W, C)."""
    B, H, W, C = x.shape
    rows = []
    for i in range(out_size):
        h0 = (i * H) // out_size
        h1 = ((i + 1) * H + out_size - 1) // out_size
        cols = []
        for j in range(out_size):
            w0 = (j * W) // out_size
            w1 = ((j + 1) * W + out_size - 1) // out_size
            cols.append(jnp.mean(x[:, h0:h1, w0:w1, :], axis=(1, 2)))
        rows.append(jnp.stack(cols, axis=1))           # (B, out, C)
    return jnp.stack(rows, axis=1)                     # (B, out, out, C)


def bilinear_matrix(in_size, out_size):
    """Row-interp matrix for F.interpolate(mode='bilinear', align_corners=False)."""
    scale = in_size / out_size
    L = np.zeros((out_size, in_size), dtype=np.float32)
    for i in range(out_size):
        src = scale * (i + 0.5) - 0.5
        src = max(src, 0.0)                            # PyTorch clamps negatives
        i0 = min(int(np.floor(src)), in_size - 1)
        i1 = min(i0 + 1, in_size - 1)
        w1 = src - i0
        L[i, i0] += 1.0 - w1
        L[i, i1] += w1
    return jnp.asarray(L)


def bilinear_upsample_nhwc(x, H, W):
    """x: (B, h, w, C) -> (B, H, W, C), align_corners=False."""
    _, h, w, _ = x.shape
    Lh = bilinear_matrix(h, H)                         # (H, h)
    Lw = bilinear_matrix(w, W)                         # (W, w)
    return jnp.einsum("ij,bjkc,lk->bilc", Lh, x, Lw)


# ----------------------------------------------------------------------------
# Parameters (deterministic synthetic init; BN folded to scale/bias, eval mode)
# ----------------------------------------------------------------------------
def _fold_bn(gamma, beta, mean, var, eps=1e-5):
    scale = gamma / jnp.sqrt(var + eps)
    return scale, beta - mean * scale


def init_params(key, in_channels, bin_sizes):
    c_out = in_channels // len(bin_sizes)
    c_cat = in_channels + c_out * len(bin_sizes)
    params = {"stages": []}
    for _ in bin_sizes:
        k1, k2, k3, k4, k5, key = jax.random.split(key, 6)
        w = 0.1 * jax.random.normal(k1, (c_out, in_channels, 1, 1), jnp.float32)
        gamma = 1.0 + 0.1 * jax.random.normal(k2, (c_out,), jnp.float32)
        beta = 0.05 * jax.random.normal(k3, (c_out,), jnp.float32)
        mean = 0.05 * jax.random.normal(k4, (c_out,), jnp.float32)
        var = 1.0 + 0.1 * jax.random.uniform(k5, (c_out,), jnp.float32)
        scale, bias = _fold_bn(gamma, beta, mean, var)
        params["stages"].append({"conv_w": w, "bn_scale": scale, "bn_bias": bias})
    k1, k2, k3, k4, k5, key = jax.random.split(key, 6)
    w = 0.1 * jax.random.normal(k1, (c_out, c_cat, 3, 3), jnp.float32)
    gamma = 1.0 + 0.1 * jax.random.normal(k2, (c_out,), jnp.float32)
    beta = 0.05 * jax.random.normal(k3, (c_out,), jnp.float32)
    mean = 0.05 * jax.random.normal(k4, (c_out,), jnp.float32)
    var = 1.0 + 0.1 * jax.random.uniform(k5, (c_out,), jnp.float32)
    scale, bias = _fold_bn(gamma, beta, mean, var)
    params["bottleneck"] = {"conv_w": w, "bn_scale": scale, "bn_bias": bias}
    return params


# ----------------------------------------------------------------------------
# old_PSPModule.forward
# ----------------------------------------------------------------------------
def psp_forward(x, params, bin_sizes):
    """x: (B, C_in, H, W) NCHW -> (B, C_in // len(bin_sizes), H, W) NCHW."""
    B, C_in, H, W = x.shape
    n_stages = len(bin_sizes)
    c_out = C_in // n_stages

    x_nhwc = jnp.transpose(x, (0, 2, 3, 1))                        # NHWC once

    pooled_rows, row_sizes = [], []
    for b_s in bin_sizes:
        pooled = adaptive_avg_pool2d_nhwc(x_nhwc, b_s)             # (B,b,b,C_in)
        pooled_rows.append(pooled.reshape(B * b_s * b_s, C_in))
        row_sizes.append(B * b_s * b_s)

    pyramids = [x_nhwc]
    if n_stages * c_out <= 128:
        # All stage 1x1 convs fused in ONE lane-dense launch: the block-diagonal
        # waste is free while the stacked N fits a single 128-lane tile.
        x_pool = jnp.concatenate(pooled_rows, axis=0)              # (M_tot, C_in)
        w_all = jnp.concatenate(
            [p["conv_w"].reshape(c_out, C_in).T for p in params["stages"]], axis=1)
        s_all = jnp.concatenate([p["bn_scale"] for p in params["stages"]])
        b_all = jnp.concatenate([p["bn_bias"] for p in params["stages"]])
        y_all = fused_matmul_bn_relu(x_pool, w_all, s_all, b_all)  # bf16
        off = 0
        for s_idx, b_s in enumerate(bin_sizes):
            rows = row_sizes[s_idx]
            y = y_all[off:off + rows, s_idx * c_out:(s_idx + 1) * c_out]
            y = y.reshape(B, b_s, b_s, c_out)
            pyramids.append(bilinear_upsample_nhwc(y, H, W))
            off += rows
    else:
        # At real PSPNet widths the fused launch would waste n_stages x MACs and
        # weight DMA on the off-diagonal blocks -> run each stage separately.
        for s_idx, b_s in enumerate(bin_sizes):
            p = params["stages"][s_idx]
            y = fused_matmul_bn_relu(pooled_rows[s_idx],
                                     p["conv_w"].reshape(c_out, C_in).T,
                                     p["bn_scale"], p["bn_bias"])
            y = y.reshape(B, b_s, b_s, c_out)
            pyramids.append(bilinear_upsample_nhwc(y, H, W))

    cat = jnp.concatenate(pyramids, axis=-1)                       # (B,H,W,C_cat)

    out = conv3x3_bn_relu_nhwc(cat,
                               params["bottleneck"]["conv_w"],
                               params["bottleneck"]["bn_scale"],
                               params["bottleneck"]["bn_bias"])    # (B,H,W,c_out)
    return jnp.transpose(out, (0, 3, 1, 2)).astype(jnp.float32)    # back to NCHW


# ----------------------------------------------------------------------------
if __name__ == "__main__":
    bin_sizes = (1, 2, 3, 6)
    B, C_in, H, W = 2, 32, 12, 12

    key = jax.random.PRNGKey(0)
    kx, kp = jax.random.split(key)
    x = jax.random.normal(kx, (B, C_in, H, W), jnp.float32)
    params = init_params(kp, C_in, bin_sizes)

    fwd = jax.jit(lambda xx: psp_forward(xx, params, bin_sizes))
    out = jax.block_until_ready(fwd(x))

    c_out = C_in // len(bin_sizes)
    assert out.shape == (B, c_out, H, W), out.shape
    assert bool(jnp.all(jnp.isfinite(out)))
    assert bool(jnp.all(out >= 0.0))   # ReLU output
    print("KERNEL_OK")
</pallas_src>

<mosaic_0001>
module attributes {stable_mosaic.version = 11 : i64} {
  func.func @_matmul_bn_relu_kernel(%arg0: i32, %arg1: i32, %arg2: i32, %arg3: memref<112x128xbf16, #tpu.memory_space<vmem>>, %arg4: memref<128x128xbf16, #tpu.memory_space<vmem>>, %arg5: memref<1x128xf32, #tpu.memory_space<vmem>>, %arg6: memref<1x128xf32, #tpu.memory_space<vmem>>, %arg7: memref<112x128xbf16, #tpu.memory_space<vmem>>, %arg8: memref<112x128xf32, #tpu.memory_space<vmem>>) attributes {dimension_semantics = [#tpu.dimension_semantics<parallel>, #tpu.dimension_semantics<parallel>, #tpu.dimension_semantics<arbitrary>], iteration_bounds = array<i64: 1, 1, 1>, scalar_prefetch = 0 : i64, scratch_operands = 1 : i64, tpu.core_type = #tpu.core_type<tc>, window_params = [{transform_indices = @transform_0, window_bounds = array<i64: 112, 128>}, {transform_indices = @transform_1, window_bounds = array<i64: 128, 128>}, {transform_indices = @transform_2, window_bounds = array<i64: 1, 128>}, {transform_indices = @transform_3, window_bounds = array<i64: 1, 128>}, {transform_indices = @transform_4, window_bounds = array<i64: 112, 128>}]} {
    %c0_i32 = arith.constant 0 : i32
    %0 = arith.cmpi eq, %arg2, %c0_i32 : i32
    %1 = arith.extui %0 : i1 to i32
    %c0_i32_0 = arith.constant 0 : i32
    %2 = arith.cmpi ne, %1, %c0_i32_0 : i32
    scf.if %2 {
      %cst_10 = arith.constant 0.000000e+00 : f32
      %12 = vector.broadcast %cst_10 : f32 to vector<112x128xf32>
      %c0_11 = arith.constant 0 : index
      %c0_12 = arith.constant 0 : index
      %13 = vector.load %arg8[%c0_11, %c0_12] : memref<112x128xf32, #tpu.memory_space<vmem>>, vector<112x128xf32>
      tpu.vector_store %arg8[%c0_11, %c0_12], %12 {strides = array<i32>} : memref<112x128xf32, #tpu.memory_space<vmem>>, vector<112x128xf32>,
    } else {
    }
    %c0 = arith.constant 0 : index
    %c0_1 = arith.constant 0 : index
    %3 = vector.load %arg8[%c0, %c0_1] : memref<112x128xf32, #tpu.memory_space<vmem>>, vector<112x128xf32>
    %c0_2 = arith.constant 0 : index
    %c0_3 = arith.constant 0 : index
    %4 = vector.load %arg3[%c0_2, %c0_3] : memref<112x128xbf16, #tpu.memory_space<vmem>>, vector<112x128xbf16>
    %c0_4 = arith.constant 0 : index
    %c0_5 = arith.constant 0 : index
    %5 = vector.load %arg4[%c0_4, %c0_5] : memref<128x128xbf16, #tpu.memory_space<vmem>>, vector<128x128xbf16>
    %cst = arith.constant dense<0.000000e+00> : vector<112x128xf32>
    %6 = tpu.matmul %4, %5, %cst {dimension_numbers = #tpu.dot_dimension_numbers<[1], [0], [0], [1], [0, 0, 1, 1], [], []>} : vector<112x128xbf16>, vector<128x128xbf16>, vector<112x128xf32> -> vector<112x128xf32>
    %7 = arith.addf %3, %6 : vector<112x128xf32>
    %c0_6 = arith.constant 0 : index
    %c0_7 = arith.constant 0 : index
    %8 = vector.load %arg8[%c0_6, %c0_7] : memref<112x128xf32, #tpu.memory_space<vmem>>, vector<112x128xf32>
    tpu.vector_store %arg8[%c0_6, %c0_7], %7 {strides = array<i32>} : memref<112x128xf32, #tpu.memory_space<vmem>>, vector<112x128xf32>,
    %c0_i32_8 = arith.constant 0 : i32
    %9 = arith.cmpi eq, %arg2, %c0_i32_8 : i32
    %10 = arith.extui %9 : i1 to i32
    %c0_i32_9 = arith.constant 0 : i32
    %11 = arith.cmpi ne, %10, %c0_i32_9 : i32
    scf.if %11 {
      %c0_10 = arith.constant 0 : index
      %c0_11 = arith.constant 0 : index
      %12 = vector.load %arg8[%c0_10, %c0_11] : memref<112x128xf32, #tpu.memory_space<vmem>>, vector<112x128xf32>
      %c0_12 = arith.constant 0 : index
      %c0_13 = arith.constant 0 : index
      %13 = vector.load %arg5[%c0_12, %c0_13] : memref<1x128xf32, #tpu.memory_space<vmem>>, vector<1x128xf32>
      %14 = vector.broadcast %13 : vector<1x128xf32> to vector<112x128xf32>
      %15 = arith.mulf %12, %14 : vector<112x128xf32>
      %c0_14 = arith.constant 0 : index
      %c0_15 = arith.constant 0 : index
      %16 = vector.load %arg6[%c0_14, %c0_15] : memref<1x128xf32, #tpu.memory_space<vmem>>, vector<1x128xf32>
      %17 = vector.broadcast %16 : vector<1x128xf32> to vector<112x128xf32>
      %18 = arith.addf %15, %17 : vector<112x128xf32>
      %cst_16 = arith.constant 0.000000e+00 : f32
      %19 = vector.broadcast %cst_16 : f32 to vector<112x128xf32>
      %20 = arith.maximumf %18, %19 : vector<112x128xf32>
      %21 = arith.truncf %20 : vector<112x128xf32> to vector<112x128xbf16>
      %c0_17 = arith.constant 0 : index
      %c0_18 = arith.constant 0 : index
      %22 = vector.load %arg7[%c0_17, %c0_18] : memref<112x128xbf16, #tpu.memory_space<vmem>>, vector<112x128xbf16>
      tpu.vector_store %arg7[%c0_17, %c0_18], %21 {strides = array<i32>} : memref<112x128xbf16, #tpu.memory_space<vmem>>, vector<112x128xbf16>,
    } else {
    }
    return
  }
  func.func @transform_0(%arg0: i32, %arg1: i32, %arg2: i32) -> (i32, i32) {
    %c0_i32 = arith.constant 0 : i32
    return %arg0, %arg2 : i32, i32
  }
  func.func @transform_1(%arg0: i32, %arg1: i32, %arg2: i32) -> (i32, i32) {
    %c0_i32 = arith.constant 0 : i32
    return %arg2, %arg1 : i32, i32
  }
  func.func @transform_2(%arg0: i32, %arg1: i32, %arg2: i32) -> (i32, i32) {
    %c0_i32 = arith.constant 0 : i32
    %c0_i32_0 = arith.constant 0 : i32
    return %c0_i32, %arg1 : i32, i32
  }
  func.func @transform_3(%arg0: i32, %arg1: i32, %arg2: i32) -> (i32, i32) {
    %c0_i32 = arith.constant 0 : i32
    %c0_i32_0 = arith.constant 0 : i32
    return %c0_i32, %arg1 : i32, i32
  }
  func.func @transform_4(%arg0: i32, %arg1: i32, %arg2: i32) -> (i32, i32) {
    %c0_i32 = arith.constant 0 : i32
    return %arg0, %arg1 : i32, i32
  }
}

module attributes {stable_mosaic.version = 11 : i64} {
  func.func @_conv3x3_bn_relu_kernel(%arg0: i32, %arg1: i32, %arg2: i32, %arg3: memref<224x128xbf16, #tpu.memory_space<vmem>>, %arg4: memref<3x3x128x128xbf16, #tpu.memory_space<vmem>>, %arg5: memref<1x128xf32, #tpu.memory_space<vmem>>, %arg6: memref<1x128xf32, #tpu.memory_space<vmem>>, %arg7: memref<224x128xbf16, #tpu.memory_space<vmem>>, %arg8: memref<224x128xf32, #tpu.memory_space<vmem>>) attributes {dimension_semantics = [#tpu.dimension_semantics<parallel>, #tpu.dimension_semantics<parallel>, #tpu.dimension_semantics<arbitrary>], iteration_bounds = array<i64: 1, 2, 1>, scalar_prefetch = 0 : i64, scratch_operands = 1 : i64, tpu.core_type = #tpu.core_type<tc>, window_params = [{transform_indices = @transform_0, window_bounds = array<i64: 224, 128>}, {transform_indices = @transform_1, window_bounds = array<i64: 3, 3, 128, 128>}, {transform_indices = @transform_2, window_bounds = array<i64: 1, 128>}, {transform_indices = @transform_3, window_bounds = array<i64: 1, 128>}, {transform_indices = @transform_4, window_bounds = array<i64: 224, 128>}]} {
    %c0_i32 = arith.constant 0 : i32
    %0 = arith.cmpi eq, %arg2, %c0_i32 : i32
    %1 = arith.extui %0 : i1 to i32
    %c0_i32_0 = arith.constant 0 : i32
    %2 = arith.cmpi ne, %1, %c0_i32_0 : i32
    scf.if %2 {
      %cst_50 = arith.constant 0.000000e+00 : f32
      %62 = vector.broadcast %cst_50 : f32 to vector<224x128xf32>
      %c0_51 = arith.constant 0 : index
      %c0_52 = arith.constant 0 : index
      %63 = vector.load %arg8[%c0_51, %c0_52] : memref<224x128xf32, #tpu.memory_space<vmem>>, vector<224x128xf32>
      tpu.vector_store %arg8[%c0_51, %c0_52], %62 {strides = array<i32>} : memref<224x128xf32, #tpu.memory_space<vmem>>, vector<224x128xf32>,
    } else {
    }
    %c0 = arith.constant 0 : index
    %c0_1 = arith.constant 0 : index
    %3 = vector.load %arg3[%c0, %c0_1] : memref<224x128xbf16, #tpu.memory_space<vmem>>, vector<224x128xbf16>
    %4 = arith.extf %3 : vector<224x128xbf16> to vector<224x128xf32>
    %c0_2 = arith.constant 0 : index
    %c0_3 = arith.constant 0 : index
    %5 = vector.load %arg8[%c0_2, %c0_3] : memref<224x128xf32, #tpu.memory_space<vmem>>, vector<224x128xf32>
    %c17_i32 = arith.constant 17 : i32
    %6 = tpu.dynamic_rotate %4 by %c17_i32 dim 0 : vector<224x128xf32>, i32 -> vector<224x128xf32>
    %7 = arith.truncf %6 : vector<224x128xf32> to vector<224x128xbf16>
    %c0_4 = arith.constant 0 : index
    %c0_5 = arith.constant 0 : index
    %c0_6 = arith.constant 0 : index
    %c0_7 = arith.constant 0 : index
    %8 = vector.load %arg4[%c0_4, %c0_5, %c0_6, %c0_7] : memref<3x3x128x128xbf16, #tpu.memory_space<vmem>>, vector<1x1x128x128xbf16>
    %9 = vector.shape_cast %8 : vector<1x1x128x128xbf16> to vector<128x128xbf16>
    %cst = arith.constant dense<0.000000e+00> : vector<224x128xf32>
    %10 = tpu.matmul %7, %9, %cst {dimension_numbers = #tpu.dot_dimension_numbers<[1], [0], [0], [1], [0, 0, 1, 1], [], []>} : vector<224x128xbf16>, vector<128x128xbf16>, vector<224x128xf32> -> vector<224x128xf32>
    %11 = arith.addf %5, %10 : vector<224x128xf32>
    %c16_i32 = arith.constant 16 : i32
    %12 = tpu.dynamic_rotate %4 by %c16_i32 dim 0 : vector<224x128xf32>, i32 -> vector<224x128xf32>
    %13 = arith.truncf %12 : vector<224x128xf32> to vector<224x128xbf16>
    %c0_8 = arith.constant 0 : index
    %c1 = arith.constant 1 : index
    %c0_9 = arith.constant 0 : index
    %c0_10 = arith.constant 0 : index
    %14 = vector.load %arg4[%c0_8, %c1, %c0_9, %c0_10] : memref<3x3x128x128xbf16, #tpu.memory_space<vmem>>, vector<1x1x128x128xbf16>
    %15 = vector.shape_cast %14 : vector<1x1x128x128xbf16> to vector<128x128xbf16>
    %cst_11 = arith.constant dense<0.000000e+00> : vector<224x128xf32>
    %16 = tpu.matmul %13, %15, %cst_11 {dimension_numbers = #tpu.dot_dimension_numbers<[1], [0], [0], [1], [0, 0, 1, 1], [], []>} : vector<224x128xbf16>, vector<128x128xbf16>, vector<224x128xf32> -> vector<224x128xf32>
    %17 = arith.addf %11, %16 : vector<224x128xf32>
    %c15_i32 = arith.constant 15 : i32
    %18 = tpu.dynamic_rotate %4 by %c15_i32 dim 0 : vector<224x128xf32>, i32 -> vector<224x128xf32>
    %19 = arith.truncf %18 : vector<224x128xf32> to vector<224x128xbf16>
    %c0_12 = arith.constant 0 : index
    %c2 = arith.constant 2 : index
    %c0_13 = arith.constant 0 : index
    %c0_14 = arith.constant 0 : index
    %20 = vector.load %arg4[%c0_12, %c2, %c0_13, %c0_14] : memref<3x3x128x128xbf16, #tpu.memory_space<vmem>>, vector<1x1x128x128xbf16>
    %21 = vector.shape_cast %20 : vector<1x1x128x128xbf16> to vector<128x128xbf16>
    %cst_15 = arith.constant dense<0.000000e+00> : vector<224x128xf32>
    %22 = tpu.matmul %19, %21, %cst_15 {dimension_numbers = #tpu.dot_dimension_numbers<[1], [0], [0], [1], [0, 0, 1, 1], [], []>} : vector<224x128xbf16>, vector<128x128xbf16>, vector<224x128xf32> -> vector<224x128xf32>
    %23 = arith.addf %17, %22 : vector<224x128xf32>
    %c1_i32 = arith.constant 1 : i32
    %24 = tpu.dynamic_rotate %4 by %c1_i32 dim 0 : vector<224x128xf32>, i32 -> vector<224x128xf32>
    %25 = arith.truncf %24 : vector<224x128xf32> to vector<224x128xbf16>
    %c1_16 = arith.constant 1 : index
    %c0_17 = arith.constant 0 : index
    %c0_18 = arith.constant 0 : index
    %c0_19 = arith.constant 0 : index
    %26 = vector.load %arg4[%c1_16, %c0_17, %c0_18, %c0_19] : memref<3x3x128x128xbf16, #tpu.memory_space<vmem>>, vector<1x1x128x128xbf16>
    %27 = vector.shape_cast %26 : vector<1x1x128x128xbf16> to vector<128x128xbf16>
    %cst_20 = arith.constant dense<0.000000e+00> : vector<224x128xf32>
    %28 = tpu.matmul %25, %27, %cst_20 {dimension_numbers = #tpu.dot_dimension_numbers<[1], [0], [0], [1], [0, 0, 1, 1], [], []>} : vector<224x128xbf16>, vector<128x128xbf16>, vector<224x128xf32> -> vector<224x128xf32>
    %29 = arith.addf %23, %28 : vector<224x128xf32>
    %c1_21 = arith.constant 1 : index
    %c1_22 = arith.constant 1 : index
    %c0_23 = arith.constant 0 : index
    %c0_24 = arith.constant 0 : index
    %30 = vector.load %arg4[%c1_21, %c1_22, %c0_23, %c0_24] : memref<3x3x128x128xbf16, #tpu.memory_space<vmem>>, vector<1x1x128x128xbf16>
    %31 = vector.shape_cast %30 : vector<1x1x128x128xbf16> to vector<128x128xbf16>
    %cst_25 = arith.constant dense<0.000000e+00> : vector<224x128xf32>
    %32 = tpu.matmul %3, %31, %cst_25 {dimension_numbers = #tpu.dot_dimension_numbers<[1], [0], [0], [1], [0, 0, 1, 1], [], []>} : vector<224x128xbf16>, vector<128x128xbf16>, vector<224x128xf32> -> vector<224x128xf32>
    %33 = arith.addf %29, %32 : vector<224x128xf32>
    %c223_i32 = arith.constant 223 : i32
    %34 = tpu.dynamic_rotate %4 by %c223_i32 dim 0 : vector<224x128xf32>, i32 -> vector<224x128xf32>
    %35 = arith.truncf %34 : vector<224x128xf32> to vector<224x128xbf16>
    %c1_26 = arith.constant 1 : index
    %c2_27 = arith.constant 2 : index
    %c0_28 = arith.constant 0 : index
    %c0_29 = arith.constant 0 : index
    %36 = vector.load %arg4[%c1_26, %c2_27, %c0_28, %c0_29] : memref<3x3x128x128xbf16, #tpu.memory_space<vmem>>, vector<1x1x128x128xbf16>
    %37 = vector.shape_cast %36 : vector<1x1x128x128xbf16> to vector<128x128xbf16>
    %cst_30 = arith.constant dense<0.000000e+00> : vector<224x128xf32>
    %38 = tpu.matmul %35, %37, %cst_30 {dimension_numbers = #tpu.dot_dimension_numbers<[1], [0], [0], [1], [0, 0, 1, 1], [], []>} : vector<224x128xbf16>, vector<128x128xbf16>, vector<224x128xf32> -> vector<224x128xf32>
    %39 = arith.addf %33, %38 : vector<224x128xf32>
    %c209_i32 = arith.constant 209 : i32
    %40 = tpu.dynamic_rotate %4 by %c209_i32 dim 0 : vector<224x128xf32>, i32 -> vector<224x128xf32>
    %41 = arith.truncf %40 : vector<224x128xf32> to vector<224x128xbf16>
    %c2_31 = arith.constant 2 : index
    %c0_32 = arith.constant 0 : index
    %c0_33 = arith.constant 0 : index
    %c0_34 = arith.constant 0 : index
    %42 = vector.load %arg4[%c2_31, %c0_32, %c0_33, %c0_34] : memref<3x3x128x128xbf16, #tpu.memory_space<vmem>>, vector<1x1x128x128xbf16>
    %43 = vector.shape_cast %42 : vector<1x1x128x128xbf16> to vector<128x128xbf16>
    %cst_35 = arith.constant dense<0.000000e+00> : vector<224x128xf32>
    %44 = tpu.matmul %41, %43, %cst_35 {dimension_numbers = #tpu.dot_dimension_numbers<[1], [0], [0], [1], [0, 0, 1, 1], [], []>} : vector<224x128xbf16>, vector<128x128xbf16>, vector<224x128xf32> -> vector<224x128xf32>
    %45 = arith.addf %39, %44 : vector<224x128xf32>
    %c208_i32 = arith.constant 208 : i32
    %46 = tpu.dynamic_rotate %4 by %c208_i32 dim 0 : vector<224x128xf32>, i32 -> vector<224x128xf32>
    %47 = arith.truncf %46 : vector<224x128xf32> to vector<224x128xbf16>
    %c2_36 = arith.constant 2 : index
    %c1_37 = arith.constant 1 : index
    %c0_38 = arith.constant 0 : index
    %c0_39 = arith.constant 0 : index
    %48 = vector.load %arg4[%c2_36, %c1_37, %c0_38, %c0_39] : memref<3x3x128x128xbf16, #tpu.memory_space<vmem>>, vector<1x1x128x128xbf16>
    %49 = vector.shape_cast %48 : vector<1x1x128x128xbf16> to vector<128x128xbf16>
    %cst_40 = arith.constant dense<0.000000e+00> : vector<224x128xf32>
    %50 = tpu.matmul %47, %49, %cst_40 {dimension_numbers = #tpu.dot_dimension_numbers<[1], [0], [0], [1], [0, 0, 1, 1], [], []>} : vector<224x128xbf16>, vector<128x128xbf16>, vector<224x128xf32> -> vector<224x128xf32>
    %51 = arith.addf %45, %50 : vector<224x128xf32>
    %c207_i32 = arith.constant 207 : i32
    %52 = tpu.dynamic_rotate %4 by %c207_i32 dim 0 : vector<224x128xf32>, i32 -> vector<224x128xf32>
    %53 = arith.truncf %52 : vector<224x128xf32> to vector<224x128xbf16>
    %c2_41 = arith.constant 2 : index
    %c2_42 = arith.constant 2 : index
    %c0_43 = arith.constant 0 : index
    %c0_44 = arith.constant 0 : index
    %54 = vector.load %arg4[%c2_41, %c2_42, %c0_43, %c0_44] : memref<3x3x128x128xbf16, #tpu.memory_space<vmem>>, vector<1x1x128x128xbf16>
    %55 = vector.shape_cast %54 : vector<1x1x128x128xbf16> to vector<128x128xbf16>
    %cst_45 = arith.constant dense<0.000000e+00> : vector<224x128xf32>
    %56 = tpu.matmul %53, %55, %cst_45 {dimension_numbers = #tpu.dot_dimension_numbers<[1], [0], [0], [1], [0, 0, 1, 1], [], []>} : vector<224x128xbf16>, vector<128x128xbf16>, vector<224x128xf32> -> vector<224x128xf32>
    %57 = arith.addf %51, %56 : vector<224x128xf32>
    %c0_46 = arith.constant 0 : index
    %c0_47 = arith.constant 0 : index
    %58 = vector.load %arg8[%c0_46, %c0_47] : memref<224x128xf32, #tpu.memory_space<vmem>>, vector<224x128xf32>
    tpu.vector_store %arg8[%c0_46, %c0_47], %57 {strides = array<i32>} : memref<224x128xf32, #tpu.memory_space<vmem>>, vector<224x128xf32>,
    %c0_i32_48 = arith.constant 0 : i32
    %59 = arith.cmpi eq, %arg2, %c0_i32_48 : i32
    %60 = arith.extui %59 : i1 to i32
    %c0_i32_49 = arith.constant 0 : i32
    %61 = arith.cmpi ne, %60, %c0_i32_49 : i32
    scf.if %61 {
      %c0_50 = arith.constant 0 : index
      %c0_51 = arith.constant 0 : index
      %62 = vector.load %arg8[%c0_50, %c0_51] : memref<224x128xf32, #tpu.memory_space<vmem>>, vector<224x128xf32>
      %c0_52 = arith.constant 0 : index
      %c0_53 = arith.constant 0 : index
      %63 = vector.load %arg5[%c0_52, %c0_53] : memref<1x128xf32, #tpu.memory_space<vmem>>, vector<1x128xf32>
      %64 = vector.broadcast %63 : vector<1x128xf32> to vector<224x128xf32>
      %65 = arith.mulf %62, %64 : vector<224x128xf32>
      %c0_54 = arith.constant 0 : index
      %c0_55 = arith.constant 0 : index
      %66 = vector.load %arg6[%c0_54, %c0_55] : memref<1x128xf32, #tpu.memory_space<vmem>>, vector<1x128xf32>
      %67 = vector.broadcast %66 : vector<1x128xf32> to vector<224x128xf32>
      %68 = arith.addf %65, %67 : vector<224x128xf32>
      %cst_56 = arith.constant 0.000000e+00 : f32
      %69 = vector.broadcast %cst_56 : f32 to vector<224x128xf32>
      %70 = arith.maximumf %68, %69 : vector<224x128xf32>
      %71 = arith.truncf %70 : vector<224x128xf32> to vector<224x128xbf16>
      %c0_57 = arith.constant 0 : index
      %c0_58 = arith.constant 0 : index
      %72 = vector.load %arg7[%c0_57, %c0_58] : memref<224x128xbf16, #tpu.memory_space<vmem>>, vector<224x128xbf16>
      tpu.vector_store %arg7[%c0_57, %c0_58], %71 {strides = array<i32>} : memref<224x128xbf16, #tpu.memory_space<vmem>>, vector<224x128xbf16>,
    } else {
    }
    return
  }
  func.func @transform_0(%arg0: i32, %arg1: i32, %arg2: i32) -> (i32, i32) {
    %c0_i32 = arith.constant 0 : i32
    return %arg1, %arg2 : i32, i32
  }
  func.func @transform_1(%arg0: i32, %arg1: i32, %arg2: i32) -> (i32, i32, i32, i32) {
    %c0_i32 = arith.constant 0 : i32
    %c0_i32_0 = arith.constant 0 : i32
    %c0_i32_1 = arith.constant 0 : i32
    return %c0_i32, %c0_i32_0, %arg2, %arg0 : i32, i32, i32, i32
  }
  func.func @transform_2(%arg0: i32, %arg1: i32, %arg2: i32) -> (i32, i32) {
    %c0_i32 = arith.constant 0 : i32
    %c0_i32_0 = arith.constant 0 : i32
    return %c0_i32, %arg0 : i32, i32
  }
  func.func @transform_3(%arg0: i32, %arg1: i32, %arg2: i32) -> (i32, i32) {
    %c0_i32 = arith.constant 0 : i32
    %c0_i32_0 = arith.constant 0 : i32
    return %c0_i32, %arg0 : i32, i32
  }
  func.func @transform_4(%arg0: i32, %arg1: i32, %arg2: i32) -> (i32, i32) {
    %c0_i32 = arith.constant 0 : i32
    return %arg1, %arg0 : i32, i32
  }
}

</mosaic_0001>

<bundles_post_ra>
// kernel: _lambda_.2
= control target key start
LH: loop header
LB: loop body
LE: loop exit
PB: predicated region body
PF: predicated region fallthrough
CT: control target
= control target key end

     0   :  { %s579_s1 = inlined_call_operand.vmem [shape: bf16[128,128], index: 1, kind: input, shape index: {}]   ;;  %s580_s2 = inlined_call_operand.vmem [shape: f32[1,128], index: 2, kind: input, shape index: {}]   ;;  %s581_s3 = inlined_call_operand.vmem [shape: f32[1,128], index: 3, kind: input, shape index: {}]   ;;  %s582_s0 = inlined_call_operand.vmem [shape: bf16[112,128], index: 0, kind: input, shape index: {}]   ;;  %s583_s4 = inlined_call_operand.vmem [shape: bf16[112,128], index: 4, kind: output, shape index: {}]  }
   0x1   :  { %v414_v0 = vld [vmem:[%s579_s1 + $0x38] sm:$0xff]  ;;  %v413_v1 = vld [vmem:[%s579_s1 + $0x30] sm:$0xff]  ;;  %v412_v2 = vld [vmem:[%s579_s1 + $0x28] sm:$0xff] }
   0x2   :  { %456 = vmatpush.bf16.msra.mxu1 %v414_v0  ;;  %457 = vmatpush.bf16.msra.mxu2 %v414_v0  ;;  %v411_v3 = vld [vmem:[%s579_s1 + $0x20] sm:$0xff]  ;;  %v410_v4 = vld [vmem:[%s579_s1 + $0x18] sm:$0xff]  ;;  %v409_v5 = vld [vmem:[%s579_s1 + $0x10] sm:$0xff] }
   0x3   :  { %458 = vmatpush.bf16.msra.mxu3 %v414_v0  ;;  %169 = vmatpush.bf16.msra.mxu0 %v414_v0  ;;  %v408_v6 = vld [vmem:[%s579_s1 + $0x8] sm:$0xff]  ;;  %v407_v7 = vld [vmem:[%s579_s1] sm:$0xff]  ;;  %v403_v9 = vld [vmem:[%s582_s0 + $0x18] sm:$0xff] }
   0x4   :  { %v401_v8 = vld [vmem:[%s582_s0 + $0x8] sm:$0xff]  ;;  %v400_v11 = vld [vmem:[%s582_s0] sm:$0xff]  ;;  %v402_v12 = vld [vmem:[%s582_s0 + $0x10] sm:$0xff] }
   0x5   :  { %v405_v10 = vld [vmem:[%s582_s0 + $0x28] sm:$0xff]  ;;  %v404_v13 = vld [vmem:[%s582_s0 + $0x20] sm:$0xff]  ;;  %v406_v14 = vld [vmem:[%s582_s0 + $0x30] sm:$0xff] }
   0x6   :  { %459 = vmatpush.bf16.msra.mxu1 %v413_v1  ;;  %460 = vmatpush.bf16.msra.mxu2 %v413_v1  ;;  %v480_v16 = vld [vmem:[%s580_s2] ss:$0 sm:$0xff] }
   0x7   :  { %461 = vmatpush.bf16.msra.mxu3 %v413_v1  ;;  %170 = vmatpush.bf16.msra.mxu0 %v413_v1  ;;  %v481_v20 = vld [vmem:[%s581_s3] ss:$0 sm:$0xff] }
   0xa   :  { %462 = vmatpush.bf16.msra.mxu1 %v412_v2  ;;  %463 = vmatpush.bf16.msra.mxu2 %v412_v2 }
   0xb   :  { %464 = vmatpush.bf16.msra.mxu3 %v412_v2  ;;  %171 = vmatpush.bf16.msra.mxu0 %v412_v2 }
   0xe   :  { %465 = vmatpush.bf16.msra.mxu1 %v411_v3  ;;  %466 = vmatpush.bf16.msra.mxu2 %v411_v3 }
   0xf   :  { %467 = vmatpush.bf16.msra.mxu3 %v411_v3  ;;  %172 = vmatpush.bf16.msra.mxu0 %v411_v3 }
  0x12   :  { %468 = vmatpush.bf16.msra.mxu1 %v410_v4  ;;  %469 = vmatpush.bf16.msra.mxu2 %v410_v4 }
  0x13   :  { %470 = vmatpush.bf16.msra.mxu3 %v410_v4  ;;  %173 = vmatpush.bf16.msra.mxu0 %v410_v4 }
  0x16   :  { %471 = vmatpush.bf16.msra.mxu1 %v409_v5  ;;  %472 = vmatpush.bf16.msra.mxu2 %v409_v5 }
  0x17   :  { %473 = vmatpush.bf16.msra.mxu3 %v409_v5  ;;  %174 = vmatpush.bf16.msra.mxu0 %v409_v5 }
  0x1a   :  { %474 = vmatpush.bf16.msra.mxu1 %v408_v6  ;;  %475 = vmatpush.bf16.msra.mxu2 %v408_v6 }
  0x1b   :  { %476 = vmatpush.bf16.msra.mxu3 %v408_v6  ;;  %175 = vmatpush.bf16.msra.mxu0 %v408_v6 }
  0x1e   :  { %477 = vmatpush.bf16.msra.mxu1 %v407_v7  ;;  %478 = vmatpush.bf16.msra.mxu2 %v407_v7 }
  0x1f   :  { %479 = vmatpush.bf16.msra.mxu3 %v407_v7  ;;  %176 = vmatpush.bf16.msra.mxu0 %v407_v7 }
  0x21   :  { %182 = vmatmul.bf16.vlgmr.msra.gmra.mxu1 %v401_v8  ;;  %192 = vmatmul.bf16.vlgmr.msra.gmra.mxu2 %v403_v9 }
  0x22   :  { %202 = vmatmul.bf16.vlgmr.msra.gmra.mxu3 %v405_v10  ;;  %177 = vmatmul.bf16.vlgmr.msra.gmra.mxu0 %v400_v11 }
  0x31   :  { %187 = vmatmul.bf16.gmra.mxu1 %v402_v12  ;;  %197 = vmatmul.bf16.gmra.mxu2 %v404_v13 }
  0x32   :  { %207 = vmatmul.bf16.gmra.mxu3 %v406_v14 }
  0x9e   :  { %v183_v15 = vpop.f32.mrf.mxu1 }
  0x9f   :  { %v178_v17 = vpop.f32.mrf.mxu0  ;;  %v264_v19 = vmul.f32 %v480_v16, %v183_v15 }
  0xa0   :  { %v262_v18 = vmul.f32 %v480_v16, %v178_v17 }
  0xa1   :  { %v282_v25 = vadd.f32 %v481_v20, %v264_v19 }
  0xa2   :  { %v280_v24 = vadd.f32 %v481_v20, %v262_v18 }
  0xa3   :  { %v296_v34 = vmax.f32 %v282_v25, 0.0 }
  0xa4   :  { %v193_v21 = vpop.f32.mrf.mxu2  ;;  %v294_v32 = vmax.f32 %v280_v24, 0.0 }
  0xa5   :  { %v203_v22 = vpop.f32.mrf.mxu3  ;;  %v268_v29 = vmul.f32 %v480_v16, %v193_v21 }
  0xa6   :  { %v185_v23 = vpop.f32.mrf.mxu1  ;;  %v272_v31 = vmul.f32 %v480_v16, %v203_v22 }
  0xa7   :  { %v265_v26 = vmul.f32 %v480_v16, %v185_v23  ;;  %v180_v27 = vpop.f32.mrf.mxu0  ;;  %v286_v38 = vadd.f32 %v481_v20, %v268_v29 }
  0xa8   :  { %v263_v28 = vmul.f32 %v480_v16, %v180_v27  ;;  %v290_v42 = vadd.f32 %v481_v20, %v272_v31 }
  0xa9   :  { %v283_v30 = vadd.f32 %v481_v20, %v265_v26  ;;  %v300_v48 = vmax.f32 %v286_v38, 0.0 }
  0xaa   :  { %v281_v33 = vadd.f32 %v481_v20, %v263_v28  ;;  %v304_v50 = vmax.f32 %v290_v42, 0.0 }
  0xab   :  { %v297_v35 = vmax.f32 %v283_v30, 0.0 }
  0xac   :  { %v195_v36 = vpop.f32.mrf.mxu2  ;;  %v295_v37 = vmax.f32 %v281_v33, 0.0 }
  0xad   :  { %v423_v39 = vpack.c.bf16 %v297_v35, %v296_v34  ;;  %v269_v40 = vmul.f32 %v480_v16, %v195_v36  ;;  %v205_v41 = vpop.f32.mrf.mxu3 }
  0xae   :  { %v273_v43 = vmul.f32 %v480_v16, %v205_v41  ;;  %v188_v44 = vpop.f32.mrf.mxu1  ;;  %v418_v45 = vpack.c.bf16 %v295_v37, %v294_v32 }
  0xaf   :  { %450 = vst [vmem:[%s583_s4 + $0x8] sm:$0xff] %v423_v39   ;;  %v287_v46 = vadd.f32 %v481_v20, %v269_v40  ;;  %v266_v53 = vmul.f32 %v480_v16, %v188_v44 }
  0xb0   :  { %v291_v47 = vadd.f32 %v481_v20, %v273_v43  ;;  %419 = vst [vmem:[%s583_s4] sm:$0xff] %v418_v45  }
  0xb1   :  { %v301_v49 = vmax.f32 %v287_v46, 0.0  ;;  %v284_v58 = vadd.f32 %v481_v20, %v266_v53 }
  0xb2   :  { %v305_v51 = vmax.f32 %v291_v47, 0.0 }
  0xb3   :  { %v433_v52 = vpack.c.bf16 %v301_v49, %v300_v48  ;;  %v298_v63 = vmax.f32 %v284_v58, 0.0 }
  0xb4   :  { %v443_v54 = vpack.c.bf16 %v305_v51, %v304_v50  ;;  %v198_v55 = vpop.f32.mrf.mxu2 }
  0xb5   :  { %452 = vst [vmem:[%s583_s4 + $0x18] sm:$0xff] %v433_v52   ;;  %v208_v56 = vpop.f32.mrf.mxu3  ;;  %v270_v60 = vmul.f32 %v480_v16, %v198_v55 }
  0xb6   :  { %454 = vst [vmem:[%s583_s4 + $0x28] sm:$0xff] %v443_v54   ;;  %v190_v57 = vpop.f32.mrf.mxu1  ;;  %v274_v62 = vmul.f32 %v480_v16, %v208_v56 }
  0xb7   :  { %v267_v59 = vmul.f32 %v480_v16, %v190_v57  ;;  %v288_v2 = vadd.f32 %v481_v20, %v270_v60 }
  0xb8   :  { %v292_v6 = vadd.f32 %v481_v20, %v274_v62 }
  0xb9   :  { %v285_v61 = vadd.f32 %v481_v20, %v267_v59  ;;  %v302_v10 = vmax.f32 %v288_v2, 0.0 }
  0xba   :  { %v306_v12 = vmax.f32 %v292_v6, 0.0 }
  0xbb   :  { %v299_v0 = vmax.f32 %v285_v61, 0.0 }
  0xbc   :  { %v200_v1 = vpop.f32.mrf.mxu2 }
  0xbd   :  { %v428_v3 = vpack.c.bf16 %v299_v0, %v298_v63  ;;  %v271_v4 = vmul.f32 %v480_v16, %v200_v1  ;;  %v210_v5 = vpop.f32.mrf.mxu3 }
  0xbe   :  { %v275_v7 = vmul.f32 %v480_v16, %v210_v5 }
  0xbf   :  { %451 = vst [vmem:[%s583_s4 + $0x10] sm:$0xff] %v428_v3   ;;  %v289_v8 = vadd.f32 %v481_v20, %v271_v4 }
  0xc0   :  { %v293_v9 = vadd.f32 %v481_v20, %v275_v7 }
  0xc1   :  { %v303_v11 = vmax.f32 %v289_v8, 0.0 }
  0xc2   :  { %v307_v13 = vmax.f32 %v293_v9, 0.0 }
  0xc3   :  { %v438_v14 = vpack.c.bf16 %v303_v11, %v302_v10 }
  0xc4   :  { %v448_v15 = vpack.c.bf16 %v307_v13, %v306_v12 }
  0xc5   :  { %453 = vst [vmem:[%s583_s4 + $0x20] sm:$0xff] %v438_v14  }
  0xc6   :  { %455 = vst [vmem:[%s583_s4 + $0x30] sm:$0xff] %v448_v15  }

// kernel: _lambda_.3
= control target key start
LH: loop header
LB: loop body
LE: loop exit
PB: predicated region body
PF: predicated region fallthrough
CT: control target
= control target key end

     0   :  { %s3287_s15 = smov 0   ;;  %s3289_s16 = smov 0   ;;  %s4352_s0 = inlined_call_operand.vmem [shape: bf16[448,128], index: 0, kind: input, shape index: {}]   ;;  %s4353_s1 = inlined_call_operand.vmem [shape: bf16[3,3,128,128], index: 1, kind: input, shape index: {}]   ;;  %s4354_s2 = inlined_call_operand.vmem [shape: f32[1,128], index: 2, kind: input, shape index: {}]   ;;  %s4355_s3 = inlined_call_operand.vmem [shape: f32[1,128], index: 3, kind: input, shape index: {}]   ;;  %s4356_s4 = inlined_call_operand.vmem [shape: bf16[448,128], index: 4, kind: output, shape index: {}]  }
   0x1   :  { %s3291_s17 = smov 0  }
   0x2 LB: > { %s29_s18 = sadd.s32 1, %s3256_s16  ;;  %p2542_p0 = scmp.ge.s32.totalorder %s3260_s17, 1  ;;  %s3260_s17 = sphi %s3291_s17, %s14_s17   ;;  %s3256_s16 = sphi %s3289_s16, %s4447_s16   ;;  %s3252_s15 = sphi %s3287_s15, %s4446_s15  }
   0x3   : > { %p31_p1 = scmp.ge.s32.totalorder %s29_s18, 2  ;;  %p221_p2 = scmp.lt.s32.totalorder %s3260_s17, 3 }
   0x5   : > { %s4449_s18 = smov (%p31_p1, %s29_s18), 0  ;;  %p222_p3 = pnand %p2542_p0, %p221_p2 }
   0x7   : > { %225 = sbr.rel (%p222_p3) target bundleno = 696 (0x2b8), region = 36 }
   0xc   : > { %v3040_v0 = vld [vmem:[%s4353_s1 + $0x38] sm:$0xff]  ;;  %s267_s21 = smul.u32 28, %s3252_s15  ;;  %v3039_v1 = vld [vmem:[%s4353_s1 + $0x30] sm:$0xff]  ;;  %v3038_v2 = vld [vmem:[%s4353_s1 + $0x28] sm:$0xff]  ;;  %v444_v4 = vlaneseq }
   0xd   : > { %553 = vmatpush.bf16.msra.mxu0 %v3040_v0  ;;  %3188 = vmatpush.bf16.msra.mxu1 %v3040_v0  ;;  %v3037_v3 = vld [vmem:[%s4353_s1 + $0x20] sm:$0xff]  ;;  %v3036_v5 = vld [vmem:[%s4353_s1 + $0x18] sm:$0xff]  ;;  %v3035_v18 = vld [vmem:[%s4353_s1 + $0x10] sm:$0xff] }
   0xe   : > { %p268_p4 = scmp.lt.s32.totalorder %s267_s21, 55  ;;  %3190 = vmatpush.bf16.msra.mxu3 %v3040_v0  ;;  %3189 = vmatpush.bf16.msra.mxu2 %v3040_v0  ;;  %v3338_v11 = vshrl.u32 %v444_v4, 7  ;;  %v3034_v30 = vld [vmem:[%s4353_s1 + $0x8] sm:$0xff]  ;;  %v3033_v41 = vld [vmem:[%s4353_s1] sm:$0xff]  ;;  %v3048_v48 = vld [vmem:[%s4353_s1 + $0x78] sm:$0xff] }
   0xf   : > { %v3064_v49 = vld [vmem:[%s4353_s1 + $0xf8] sm:$0xff]  ;;  %v3047_v57 = vld [vmem:[%s4353_s1 + $0x70] sm:$0xff] }
  0x10   : > { %s4451_s21 = smov (!%p268_p4, %s267_s21), 55  ;;  %vm446_vm0 = vcmp.lt.s32.totalorder %v3338_v11, 1  ;;  %v3072_v50 = vld [vmem:[%s4353_s1 + $0x138] sm:$0xff]  ;;  %v3063_v60 = vld [vmem:[%s4353_s1 + $0xf0] sm:$0xff]  ;;  %vm874_vm1 = vcmp.lt.s32.totalorder %v3338_v11, 7 }
  0x11   : > { %554 = vmatpush.bf16.msra.mxu0 %v3039_v1  ;;  %3191 = vmatpush.bf16.msra.mxu1 %v3039_v1  ;;  %s2543_s26 = sshll.u32 %s4451_s21, 2  ;;  %v3056_v59 = vld [vmem:[%s4353_s1 + $0xb8] sm:$0xff]  ;;  %v3071_v62 = vld [vmem:[%s4353_s1 + $0x130] sm:$0xff] }
  0x12   : > { %3193 = vmatpush.bf16.msra.mxu3 %v3039_v1  ;;  %3192 = vmatpush.bf16.msra.mxu2 %v3039_v1  ;;  %s3325_s5 = scalar_lea.vmem %s4352_s0, %s2543_s26  ;;  %s4236_s7 = scalar_lea.vmem %s4356_s4, %s2543_s26 }
  0x13   : > { %v357_v6 = vld [vmem:[%s3325_s5 + $0x64] sm:$0xff]   ;;  %v359_v7 = vld [vmem:[%s3325_s5 + $0x6c] sm:$0xf]  ;;  %v337_v8 = vld [vmem:[%s3325_s5 + $0x14] sm:$0xff]  }
  0x14   : > { %v3334_v9 = vld [vmem:[%s3325_s5 + $0x1c] sm:$0xff]   ;;  %v3336_v10 = vunpack.c.l.bf16 %v357_v6  ;;  %v349_v12 = vld [vmem:[%s3325_s5 + $0x44] sm:$0xff]   ;;  %v3342_v13 = vld [vmem:[%s3325_s5 + $0x4c] sm:$0xff]   ;;  %v3344_v14 = vunpack.c.h.bf16 %v357_v6  ;;  %v3346_v15 = vunpack.c.l.bf16 %v359_v7  ;;  %v3348_v16 = vunpack.c.h.bf16 %v337_v8 }
  0x15   : > { %555 = vmatpush.bf16.msra.mxu0 %v3038_v2  ;;  %3194 = vmatpush.bf16.msra.mxu1 %v3038_v2  ;;  %v3351_v17 = vunpack.c.l.bf16 %v3334_v9  ;;  %v3356_v19 = vunpack.c.l.bf16 %v337_v8  ;;  %v3358_v20 = vunpack.c.l.bf16 %v349_v12  ;;  %v3360_v21 = vunpack.c.h.bf16 %v349_v12  ;;  %v345_v23 = vld [vmem:[%s3325_s5 + $0x34] sm:$0xff]   ;;  %v3367_v24 = vld [vmem:[%s3325_s5 + $0x3c] sm:$0xff]   ;;  %v3449_v58 = vld [vmem:[%s3325_s5 + $0x24] sm:$0xff]  }
  0x16   : > { %3196 = vmatpush.bf16.msra.mxu3 %v3038_v2  ;;  %3195 = vmatpush.bf16.msra.mxu2 %v3038_v2  ;;  %v3363_v22 = vunpack.c.l.bf16 %v3342_v13  ;;  %v441_v25 = vrot.slane %v3336_v10, 7  ;;  %v442_v26 = vrot.slane %v3344_v14, 7  ;;  %v443_v27 = vrot.slane %v3346_v15, 7  ;;  %v3435_v54 = vld [vmem:[%s3325_s5] sm:$0xff]   ;;  %v3458_v61 = vld [vmem:[%s3325_s5 + $0x54] sm:$0xff]   ;;  %v3046_v6 = vld [vmem:[%s4353_s1 + $0x68] sm:$0xff] }
  0x17   : > { %v422_v28 = vrot.slane %v3348_v16, 7  ;;  %v423_v29 = vrot.slane %v3351_v17, 7  ;;  %v421_v31 = vrot.slane %v3356_v19, 7  ;;  %v3379_v32 = vunpack.c.l.bf16 %v345_v23  ;;  %4385 = vst [vmem:[#allocation3_spill] sm:$0xff] %v3435_v54  ;;  %v3055_v7 = vld [vmem:[%s4353_s1 + $0xb0] sm:$0xff]  ;;  %v3062_v8 = vld [vmem:[%s4353_s1 + $0xe8] sm:$0xff] }
  0x18   : > { %v3381_v33 = vunpack.c.h.bf16 %v345_v23  ;;  %v3384_v34 = vunpack.c.l.bf16 %v3367_v24  ;;  %v433_v35 = vrot.slane %v3358_v20, 7  ;;  %v434_v36 = vrot.slane %v3360_v21, 7 }
  0x19   : > { %556 = vmatpush.bf16.msra.mxu0 %v3037_v3  ;;  %3197 = vmatpush.bf16.msra.mxu1 %v3037_v3  ;;  %v435_v37 = vrot.slane %v3363_v22, 7  ;;  %v447_v38 = vsel %vm446_vm0, %v442_v26, %v443_v27  ;;  %v448_v39 = vsel %vm446_vm0, %v441_v25, %v442_v26  ;;  %v467_v40 = vsel %vm446_vm0, %v422_v28, %v423_v29 }
  0x1a   : > { %3199 = vmatpush.bf16.msra.mxu3 %v3037_v3  ;;  %3198 = vmatpush.bf16.msra.mxu2 %v3037_v3  ;;  %v468_v42 = vsel %vm446_vm0, %v421_v31, %v422_v28  ;;  %v429_v43 = vrot.slane %v3379_v32, 7  ;;  %v430_v44 = vrot.slane %v3381_v33, 7  ;;  %v431_v45 = vrot.slane %v3384_v34, 7 }
  0x1b   : > { %v455_v46 = vsel %vm446_vm0, %v434_v36, %v435_v37  ;;  %v456_v47 = vsel %vm446_vm0, %v433_v35, %v434_v36  ;;  %v3428_v51 = vpack.c.bf16 %v447_v38, %v448_v39  ;;  %v3430_v52 = vpack.c.bf16 %v467_v40, %v468_v42  ;;  %v3045_v36 = vld [vmem:[%s4353_s1 + $0x60] sm:$0xff]  ;;  %v3054_v38 = vld [vmem:[%s4353_s1 + $0xa8] sm:$0xff] }
  0x1c   : > { %v3432_v53 = vpack.c.bf16 %v455_v46, %v456_v47  ;;  %v459_v55 = vsel %vm446_vm0, %v430_v44, %v431_v45  ;;  %v460_v56 = vsel %vm446_vm0, %v429_v43, %v430_v44  ;;  %v360_v63 = vunpack.c.l.bf16 %v3435_v54  ;;  %v3069_v39 = vld [vmem:[%s4353_s1 + $0x120] sm:$0xff] }
  0x1d   : > { %557 = vmatpush.bf16.msra.mxu0 %v3036_v5  ;;  %3200 = vmatpush.bf16.msra.mxu1 %v3036_v5  ;;  %v3466_v0 = vpack.c.bf16 %v459_v55, %v460_v56  ;;  %v361_v1 = vunpack.c.h.bf16 %v3435_v54  ;;  %v3471_v2 = vunpack.c.h.bf16 %v3334_v9  ;;  %v3474_v3 = vunpack.c.l.bf16 %v3449_v58  ;;  %v3070_v9 = vld [vmem:[%s4353_s1 + $0x128] sm:$0xff] }
  0x1e   : > { %3202 = vmatpush.bf16.msra.mxu3 %v3036_v5  ;;  %3201 = vmatpush.bf16.msra.mxu2 %v3036_v5  ;;  %v3477_v4 = vunpack.c.h.bf16 %v3342_v13  ;;  %v3480_v5 = vunpack.c.l.bf16 %v3458_v61  ;;  %v416_v12 = vrot.slane %v360_v63, 7  ;;  %v3504_v26 = vunpack.c.h.bf16 %v3367_v24  ;;  %v3061_v24 = vld [vmem:[%s4353_s1 + $0xe0] sm:$0xff]  ;;  %v3561_v56 = vld [vmem:[%s3325_s5 + $0x8] sm:$0xff]  }
  0x1f   : > { %4386 = vst [vmem:[#allocation4_spill] sm:$0xff] %v3466_v0  ;;  %v3499_v13 = vrot.slane %v361_v1, 7  ;;  %v425_v23 = vrot.slane %v3474_v3, 7 }
  0x20   : > { %v436_v28 = vrot.slane %v3477_v4, 7  ;;  %v474_v40 = vsel %vm446_vm0, %v443_v27, %v416_v12  ;;  %v432_v46 = vrot.slane %v3504_v26, 7 }
  0x21   : > { %558 = vmatpush.bf16.msra.mxu0 %v3035_v18  ;;  %3203 = vmatpush.bf16.msra.mxu1 %v3035_v18 }
  0x22   : > { %3205 = vmatpush.bf16.msra.mxu3 %v3035_v18  ;;  %3204 = vmatpush.bf16.msra.mxu2 %v3035_v18  ;;  %v424_v18 = vrot.slane %v3471_v2, 7  ;;  %v454_v47 = vsel %vm446_vm0, %v435_v37, %v436_v28  ;;  %v3068_v37 = vld [vmem:[%s4353_s1 + $0x118] sm:$0xff] }
  0x24   : > { %v465_v42 = vsel %vm446_vm0, %v424_v18, %v425_v23  ;;  %v466_v44 = vsel %vm446_vm0, %v423_v29, %v424_v18  ;;  %v3053_v29 = vld [vmem:[%s4353_s1 + $0xa0] sm:$0xff] }
  0x25   : > { %559 = vmatpush.bf16.msra.mxu0 %v3034_v30  ;;  %3206 = vmatpush.bf16.msra.mxu1 %v3034_v30  ;;  %v3558_v55 = vpack.c.bf16 %v465_v42, %v466_v44 }
  0x26   : > { %3208 = vmatpush.bf16.msra.mxu3 %v3034_v30  ;;  %3207 = vmatpush.bf16.msra.mxu2 %v3034_v30  ;;  %v437_v30 = vrot.slane %v3480_v5, 7 }
  0x28   : > { %v453_v27 = vsel %vm446_vm0, %v436_v28, %v437_v30 }
  0x29   : > { %560 = vmatpush.bf16.msra.mxu0 %v3033_v41  ;;  %3209 = vmatpush.bf16.msra.mxu1 %v3033_v41 }
  0x2a   : > { %3211 = vmatpush.bf16.msra.mxu3 %v3033_v41  ;;  %3210 = vmatpush.bf16.msra.mxu2 %v3033_v41  ;;  %v473_v41 = vsel %vm446_vm0, %v416_v12, %v3499_v13  ;;  %v3593_v12 = vunpack.c.h.bf16 %v3449_v58 }
  0x2c   : > { %561 = vmatmul.bf16.vlgmr.msra.gmra.mxu0 %v3428_v51  ;;  %581 = vmatmul.bf16.vlgmr.msra.gmra.mxu1 %v3430_v52 }
  0x2d   : > { %739 = vmatpush.bf16.msrb.mxu1 %v3048_v48  ;;  %1410 = vmatpush.bf16.msrb.mxu0 %v3072_v50  ;;  %v3044_v48 = vld [vmem:[%s4353_s1 + $0x58] sm:$0xff]  ;;  %v3556_v50 = vpack.c.bf16 %v473_v41, %v474_v40  ;;  %v3042_v40 = vld [vmem:[%s4353_s1 + $0x48] sm:$0xff] }
  0x2e   : > { %1154 = vmatpush.bf16.msrb.mxu3 %v3064_v49  ;;  %982 = vmatpush.bf16.msrb.mxu2 %v3056_v59  ;;  %v3060_v49 = vld [vmem:[%s4353_s1 + $0xd8] sm:$0xff]  ;;  %v3566_v59 = vld [vmem:[%s3325_s5 + $0x2c] sm:$0xff]  }
  0x2f   : > { %611 = vmatmul.bf16.vlgmr.msra.gmra.mxu3 %v3432_v53  ;;  %601 = vmatmul.bf16.vlgmr.msra.gmra.mxu2 %v3466_v0  ;;  %4387 = vst [vmem:[#allocation5_spill] sm:$0xff] %v3556_v50  ;;  %v3596_v18 = vunpack.c.l.bf16 %v3566_v59  ;;  %v3058_v41 = vld [vmem:[%s4353_s1 + $0xc8] sm:$0xff] }
  0x31   : > { %740 = vmatpush.bf16.msrb.mxu1 %v3047_v57  ;;  %1411 = vmatpush.bf16.msrb.mxu0 %v3071_v62  ;;  %v3563_v57 = vpack.c.bf16 %v453_v27, %v454_v47  ;;  %v458_v62 = vsel %vm446_vm0, %v431_v45, %v432_v46  ;;  %v363_v45 = vunpack.c.h.bf16 %v3561_v56  ;;  %v427_v27 = vrot.slane %v3596_v18, 7 }
  0x32   : > { %1155 = vmatpush.bf16.msrb.mxu3 %v3063_v60  ;;  %983 = vmatpush.bf16.msrb.mxu2 %v3055_v7  ;;  %v457_v60 = vsel %vm446_vm0, %v432_v46, %v433_v35  ;;  %v3043_v7 = vld [vmem:[%s4353_s1 + $0x50] sm:$0xff]  ;;  %v426_v46 = vrot.slane %v3593_v12, 7 }
  0x33   : > { %v3059_v35 = vld [vmem:[%s4353_s1 + $0xd0] sm:$0xff]  ;;  %v3598_v28 = vpack.c.bf16 %v457_v60, %v458_v62  ;;  %v419_v44 = vrot.slane %v363_v45, 7  ;;  %v3065_v60 = vld [vmem:[%s4353_s1 + $0x100] sm:$0xff] }
  0x35   : > { %741 = vmatpush.bf16.msrb.mxu1 %v3046_v6  ;;  %1412 = vmatpush.bf16.msrb.mxu0 %v3070_v9  ;;  %v3052_v6 = vld [vmem:[%s4353_s1 + $0x98] sm:$0xff] }
  0x36   : > { %1156 = vmatpush.bf16.msrb.mxu3 %v3062_v8  ;;  %984 = vmatpush.bf16.msrb.mxu2 %v3054_v38  ;;  %v362_v8 = vunpack.c.l.bf16 %v3561_v56  ;;  %v3584_v9 = vld [vmem:[%s3325_s5 + $0x5c] sm:$0xff]   ;;  %v3606_v38 = vpack.c.bf16 %v3346_v15, %v3344_v14 }
  0x37   : > { %v3612_v58 = vunpack.c.l.bf16 %v3584_v9 }
  0x38   : > { %4388 = vst [vmem:[#allocation6_spill] sm:$0xff] %v3606_v38  ;;  %v418_v42 = vrot.slane %v362_v8, 7 }
  0x39   : > { %742 = vmatpush.bf16.msrb.mxu1 %v3045_v36  ;;  %1413 = vmatpush.bf16.msrb.mxu0 %v3069_v39  ;;  %v3067_v36 = vld [vmem:[%s4353_s1 + $0x110] sm:$0xff] }
  0x3a   : > { %1157 = vmatpush.bf16.msrb.mxu3 %v3061_v24  ;;  %985 = vmatpush.bf16.msrb.mxu2 %v3053_v29  ;;  %v3609_v24 = vunpack.c.h.bf16 %v3458_v61  ;;  %v3051_v39 = vld [vmem:[%s4353_s1 + $0x90] sm:$0xff]  ;;  %v3066_v61 = vld [vmem:[%s4353_s1 + $0x108] sm:$0xff]  ;;  %v471_v62 = vsel %vm446_vm0, %v418_v42, %v419_v44 }
  0x3b   : > { %v3050_v29 = vld [vmem:[%s4353_s1 + $0x88] sm:$0xff] }
  0x3c   : > { %566 = vmatmul.bf16.gmra.mxu0 %v3556_v50  ;;  %586 = vmatmul.bf16.gmra.mxu1 %v3558_v55  ;;  %v438_v47 = vrot.slane %v3609_v24, 7 }
  0x3d   : > { %743 = vmatpush.bf16.msrb.mxu1 %v3044_v48  ;;  %1414 = vmatpush.bf16.msrb.mxu0 %v3068_v37  ;;  %v439_v48 = vrot.slane %v3612_v58, 7  ;;  %v3057_v37 = vld [vmem:[%s4353_s1 + $0xc0] sm:$0xff] }
  0x3e   : > { %1158 = vmatpush.bf16.msrb.mxu3 %v3060_v49  ;;  %986 = vmatpush.bf16.msrb.mxu2 %v3052_v6  ;;  %v3041_v49 = vld [vmem:[%s4353_s1 + $0x40] sm:$0xff]  ;;  %v472_v6 = vsel %vm446_vm0, %v3499_v13, %v418_v42  ;;  %v452_v13 = vsel %vm446_vm0, %v437_v30, %v438_v47  ;;  %v336_v30 = vld [vmem:[%s3325_s5 + $0x10] sm:$0xf] }
  0x3f   : > { %616 = vmatmul.bf16.gmra.mxu3 %v3563_v57  ;;  %606 = vmatmul.bf16.gmra.mxu2 %v3598_v28 }
  0x41   : > { %744 = vmatpush.bf16.msrb.mxu1 %v3043_v7  ;;  %1415 = vmatpush.bf16.msrb.mxu0 %v3067_v36  ;;  %v463_v7 = vsel %vm446_vm0, %v426_v46, %v427_v27  ;;  %v846_v36 = vrot.slane %v360_v63, 1  ;;  %v3675_v63 = vpack.c.bf16 %v471_v62, %v472_v6  ;;  %v3080_v62 = vld [vmem:[%s4353_s1 + $0x178] sm:$0xff] }
  0x42   : > { %1159 = vmatpush.bf16.msrb.mxu3 %v3059_v35  ;;  %987 = vmatpush.bf16.msrb.mxu2 %v3051_v39  ;;  %v464_v35 = vsel %vm446_vm0, %v425_v23, %v426_v46  ;;  %v4357_v39 = vrot.slane %v3344_v14, 1  ;;  %v3049_v23 = vld [vmem:[%s4353_s1 + $0x80] sm:$0xff]  ;;  %v3104_v6 = vld [vmem:[%s4353_s1 + $0x238] sm:$0xff] }
  0x45   : > { %745 = vmatpush.bf16.msrb.mxu1 %v3042_v40  ;;  %1416 = vmatpush.bf16.msrb.mxu0 %v3066_v61  ;;  %v873_v40 = vrot.slane %v3346_v15, 1  ;;  %v3088_v15 = vld [vmem:[%s4353_s1 + $0x1b8] sm:$0xff]  ;;  %v3677_v61 = vpack.c.bf16 %v463_v7, %v464_v35  ;;  %v3708_v7 = vunpack.c.h.bf16 %v3584_v9 }
  0x46   : > { %1160 = vmatpush.bf16.msrb.mxu3 %v3058_v41  ;;  %v451_v41 = vsel %vm446_vm0, %v438_v47, %v439_v48  ;;  %988 = vmatpush.bf16.msrb.mxu2 %v3050_v29  ;;  %v3690_v29 = vunpack.c.l.bf16 %v336_v30  ;;  %v848_v30 = vrot.slane %v362_v8, 1 }
  0x47   : > { %4389 = vst [vmem:[#allocation7_spill] sm:$0xff] %v3677_v61  ;;  %v3679_v42 = vpack.c.bf16 %v451_v41, %v452_v13  ;;  %v875_v46 = vsel %vm874_vm1, %v4357_v39, %v873_v40  ;;  %v902_v47 = vsel %vm874_vm1, %v873_v40, %v846_v36  ;;  %v440_v40 = vrot.slane %v3708_v7, 7 }
  0x49   : > { %746 = vmatpush.bf16.msrb.mxu1 %v3041_v49  ;;  %1417 = vmatpush.bf16.msrb.mxu0 %v3065_v60  ;;  %v3692_v49 = vpack.c.bf16 %v902_v47, %v875_v46  ;;  %v3096_v60 = vld [vmem:[%s4353_s1 + $0x1f8] sm:$0xff] }
  0x4a   : > { %1161 = vmatpush.bf16.msrb.mxu3 %v3057_v37  ;;  %989 = vmatpush.bf16.msrb.mxu2 %v3049_v23  ;;  %v3696_v37 = vunpack.c.h.bf16 %v3566_v59  ;;  %v420_v59 = vrot.slane %v3690_v29, 7 }
  0x4b   : > { %4390 = vst [vmem:[#allocation8_spill] sm:$0xff] %v3692_v49 }
  0x4c   : > { %571 = vmatmul.bf16.gmra.mxu0 %v3675_v63  ;;  %591 = vmatmul.bf16.gmra.mxu1 %v3677_v61  ;;  %v428_v35 = vrot.slane %v3696_v37, 7  ;;  %v469_v41 = vsel %vm446_vm0, %v420_v59, %v421_v31  ;;  %v470_v9 = vsel %vm446_vm0, %v419_v44, %v420_v59  ;;  %v449_v31 = vsel %vm446_vm0, %v440_v40, %v441_v25 }
  0x4d   : > { %1582 = vmatpush.bf16.msra.mxu1 %v3080_v62  ;;  %2098 = vmatpush.bf16.msra.mxu0 %v3104_v6  ;;  %v450_v44 = vsel %vm446_vm0, %v439_v48, %v440_v40  ;;  %v3736_v46 = vpack.c.bf16 %v469_v41, %v470_v9  ;;  %v3095_v48 = vld [vmem:[%s4353_s1 + $0x1f0] sm:$0xff]  ;;  %v850_v62 = vrot.slane %v3690_v29, 1  ;;  %v3019_v6 = vld [vmem:[%s3325_s5] sm:$0xff]  ;;  %v851_v41 = vrot.slane %v3356_v19, 1 }
  0x4e   : > { %1754 = vmatpush.bf16.msra.mxu2 %v3088_v15  ;;  %1926 = vmatpush.bf16.msra.mxu3 %v3096_v60  ;;  %v461_v13 = vsel %vm446_vm0, %v428_v35, %v429_v43  ;;  %v462_v23 = vsel %vm446_vm0, %v427_v27, %v428_v35  ;;  %v847_v15 = vrot.slane %v361_v1, 1  ;;  %v3740_v47 = vpack.c.bf16 %v449_v31, %v450_v44  ;;  %v3087_v27 = vld [vmem:[%s4353_s1 + $0x1b0] sm:$0xff]  ;;  %v3086_v31 = vld [vmem:[%s4353_s1 + $0x1a8] sm:$0xff] }
  0x4f   : > { %621 = vmatmul.bf16.gmra.mxu3 %v3679_v42  ;;  %990 = vmatmul.bf16.vlgmr.msrb.gmra.mxu2 %v3692_v49  ;;  %v3738_v43 = vpack.c.bf16 %v461_v13, %v462_v23  ;;  %v849_v60 = vrot.slane %v363_v45, 1  ;;  %v3103_v45 = vld [vmem:[%s4353_s1 + $0x230] sm:$0xff]  ;;  %v852_v9 = vrot.slane %v3348_v16, 1  ;;  %v3020_v13 = vld [vmem:[%s3325_s5 + $0x8] sm:$0xff] }
  0x50   : > { %v900_v1 = vsel %vm874_vm1, %v847_v15, %v848_v30  ;;  %v901_v8 = vsel %vm874_vm1, %v846_v36, %v847_v15  ;;  %v3079_v36 = vld [vmem:[%s4353_s1 + $0x170] sm:$0xff]  ;;  %v897_v15 = vsel %vm874_vm1, %v850_v62, %v851_v41  ;;  %v3094_v44 = vld [vmem:[%s4353_s1 + $0x1e8] sm:$0xff] }
  0x51   : > { %4391 = vst [vmem:[#allocation9_spill] sm:$0xff] %v3738_v43  ;;  %v3748_v25 = vpack.c.bf16 %v900_v1, %v901_v8  ;;  %1583 = vmatpush.bf16.msra.mxu1 %v3079_v36  ;;  %v898_v59 = vsel %vm874_vm1, %v849_v60, %v850_v62  ;;  %v899_v35 = vsel %vm874_vm1, %v848_v30, %v849_v60  ;;  %v3078_v1 = vld [vmem:[%s4353_s1 + $0x168] sm:$0xff]  ;;  %v853_v8 = vrot.slane %v3351_v17, 1  ;;  %v3025_v49 = vld [vmem:[%s3325_s5 + $0x30] sm:$0xff] }
  0x52   : > { %1755 = vmatpush.bf16.msra.mxu2 %v3087_v27  ;;  %1927 = vmatpush.bf16.msra.mxu3 %v3095_v48  ;;  %v3770_v40 = vpack.c.bf16 %v898_v59, %v899_v35  ;;  %v896_v23 = vsel %vm874_vm1, %v851_v41, %v852_v9  ;;  %v854_v27 = vrot.slane %v3471_v2, 1  ;;  %v3021_v48 = vld [vmem:[%s3325_s5 + $0x10] sm:$0xff]  ;;  %v855_v59 = vrot.slane %v3474_v3, 1  ;;  %v3022_v41 = vld [vmem:[%s3325_s5 + $0x18] sm:$0xff] }
  0x53   : > { %2099 = vmatpush.bf16.msra.mxu0 %v3103_v45  ;;  %v3785_v30 = vpack.c.bf16 %v896_v23, %v897_v15  ;;  %v895_v60 = vsel %vm874_vm1, %v852_v9, %v853_v8  ;;  %v856_v35 = vrot.slane %v3593_v12, 1  ;;  %v3817_v45 = vpack.c.bf16 %v3356_v19, %v3690_v29  ;;  %v3085_v19 = vld [vmem:[%s4353_s1 + $0x1a0] sm:$0xff] }
  0x54   : > { %v894_v36 = vsel %vm874_vm1, %v853_v8, %v854_v27  ;;  %v3093_v29 = vld [vmem:[%s4353_s1 + $0x1e0] sm:$0xff] }
  0x55   : > { %1584 = vmatpush.bf16.msra.mxu1 %v3078_v1  ;;  %v3806_v62 = vpack.c.bf16 %v894_v36, %v895_v60  ;;  %v892_v9 = vsel %vm874_vm1, %v855_v59, %v856_v35  ;;  %v3077_v15 = vld [vmem:[%s4353_s1 + $0x160] sm:$0xff]  ;;  %v3842_v1 = vpack.c.bf16 %v3351_v17, %v3348_v16 }
  0x56   : > { %1756 = vmatpush.bf16.msra.mxu2 %v3086_v31  ;;  %1928 = vmatpush.bf16.msra.mxu3 %v3094_v44  ;;  %v857_v31 = vrot.slane %v3596_v18, 1  ;;  %v858_v44 = vrot.slane %v3696_v37, 1  ;;  %v3023_v8 = vld [vmem:[%s3325_s5 + $0x20] sm:$0xff] }
  0x57   : > { %4392 = vst [vmem:[#allocation10_spill] sm:$0xff] %v3806_v62 }
  0x58   : > { %4394 = vst [vmem:[#allocation12_spill] sm:$0xff] %v3842_v1  ;;  %v890_v60 = vsel %vm874_vm1, %v857_v31, %v858_v44 }
  0x59   : > { %1585 = vmatpush.bf16.msra.mxu1 %v3077_v15  ;;  %v3024_v15 = vld [vmem:[%s3325_s5 + $0x28] sm:$0xff] }
  0x5a   : > { %1757 = vmatpush.bf16.msra.mxu2 %v3085_v19  ;;  %1929 = vmatpush.bf16.msra.mxu3 %v3093_v29  ;;  %v3875_v29 = vpack.c.bf16 %v3474_v3, %v3471_v2  ;;  %v3092_v3 = vld [vmem:[%s4353_s1 + $0x1d8] sm:$0xff] }
  0x5c   : > { %576 = vmatmul.bf16.gmra.mxu0 %v3736_v46  ;;  %596 = vmatmul.bf16.gmra.mxu1 %v3738_v43  ;;  %4398 = vst [vmem:[#allocation16_spill] sm:$0xff] %v3875_v29 }
  0x5e   : > { %1930 = vmatpush.bf16.msra.mxu3 %v3092_v3  ;;  %v862_v3 = vrot.slane %v3504_v26, 1 }
  0x5f   : > { %626 = vmatmul.bf16.gmra.mxu3 %v3740_v47  ;;  %995 = vmatmul.bf16.gmra.mxu2 %v3748_v25 }
  0x6c   : > { %747 = vmatmul.bf16.vlgmr.msrb.gmra.mxu1 %v3606_v38  ;;  %1418 = vmatmul.bf16.vlgmr.msrb.gmra.mxu0 %v3019_v6  ;;  %v3102_v6 = vld [vmem:[%s4353_s1 + $0x228] sm:$0xff]  ;;  %v3919_v38 = vpack.c.bf16 %v3596_v18, %v3593_v12 }
  0x6d   : > { %2100 = vmatpush.bf16.msra.mxu0 %v3102_v6  ;;  %v891_v6 = vsel %vm874_vm1, %v856_v35, %v857_v31  ;;  %v859_v35 = vrot.slane %v3379_v32, 1 }
  0x6e   : > { %v3857_v16 = vpack.c.bf16 %v890_v60, %v891_v6  ;;  %v3084_v6 = vld [vmem:[%s4353_s1 + $0x198] sm:$0xff]  ;;  %4404 = vst [vmem:[#allocation22_spill] sm:$0xff] %v3919_v38 }
  0x6f   : > { %1162 = vmatmul.bf16.vlgmr.msrb.gmra.mxu3 %v3556_v50  ;;  %1000 = vmatmul.bf16.gmra.mxu2 %v3770_v40  ;;  %v889_v60 = vsel %vm874_vm1, %v858_v44, %v859_v35  ;;  %v3076_v44 = vld [vmem:[%s4353_s1 + $0x158] sm:$0xff] }
  0x70   : > { %4395 = vst [vmem:[#allocation13_spill] sm:$0xff] %v3857_v16  ;;  %1758 = vmatpush.bf16.msra.mxu2 %v3084_v6  ;;  %1586 = vmatpush.bf16.msra.mxu1 %v3076_v44 }
  0x7c   : > { %752 = vmatmul.bf16.gmra.mxu1 %v3435_v54  ;;  %1423 = vmatmul.bf16.gmra.mxu0 %v3020_v13  ;;  %v893_v13 = vsel %vm874_vm1, %v854_v27, %v855_v59  ;;  %v3101_v27 = vld [vmem:[%s4353_s1 + $0x220] sm:$0xff]  ;;  %v861_v54 = vrot.slane %v3384_v34, 1 }
  0x7d   : > { %v3825_v23 = vpack.c.bf16 %v892_v9, %v893_v13  ;;  %2101 = vmatpush.bf16.msra.mxu0 %v3101_v27  ;;  %v860_v13 = vrot.slane %v3381_v33, 1 }
  0x7f   : > { %1167 = vmatmul.bf16.gmra.mxu3 %v3675_v63  ;;  %1005 = vmatmul.bf16.gmra.mxu2 %v3785_v30  ;;  %4393 = vst [vmem:[#allocation11_spill] sm:$0xff] %v3825_v23  ;;  %v888_v27 = vsel %vm874_vm1, %v859_v35, %v860_v13 }
  0x80   : > { %v3892_v2 = vpack.c.bf16 %v888_v27, %v889_v60  ;;  %v3100_v60 = vld [vmem:[%s4353_s1 + $0x218] sm:$0xff] }
  0x81   : > { %2102 = vmatpush.bf16.msra.mxu0 %v3100_v60  ;;  %v887_v60 = vsel %vm874_vm1, %v860_v13, %v861_v54 }
  0x82   : > { %4400 = vst [vmem:[#allocation18_spill] sm:$0xff] %v3892_v2 }
  0x8c   : > { %757 = vmatmul.bf16.gmra.mxu1 %v3561_v56  ;;  %1428 = vmatmul.bf16.gmra.mxu0 %v3021_v48 }
  0x8f   : > { %1172 = vmatmul.bf16.gmra.mxu3 %v3736_v46  ;;  %1010 = vmatmul.bf16.gmra.mxu2 %v3806_v62 }
  0x9c   : > { %762 = vmatmul.bf16.gmra.mxu1 %v3817_v45  ;;  %1433 = vmatmul.bf16.gmra.mxu0 %v3022_v41 }
  0x9f   : > { %1177 = vmatmul.bf16.gmra.mxu3 %v3430_v52  ;;  %1015 = vmatmul.bf16.gmra.mxu2 %v3825_v23 }
  0xa9   : > { %v3848_v48 = vpop.f32.mrf.mxu0  ;;  %v3850_v36 = vpop.f32.mrf.mxu1 }
  0xac   : > { %767 = vmatmul.bf16.gmra.mxu1 %v3842_v1  ;;  %1438 = vmatmul.bf16.gmra.mxu0 %v3023_v8 }
  0xaf   : > { %1182 = vmatmul.bf16.gmra.mxu3 %v3558_v55  ;;  %1020 = vmatmul.bf16.gmra.mxu2 %v3857_v16 }
  0xb1   : > { %v3863_v59 = vpop.f32.mrf.mxu0  ;;  %v3865_v41 = vpop.f32.mrf.mxu1 }
  0xb2   : > { %v3860_v17 = vpop.f32.mrf.mxu3  ;;  %v3867_v9 = vpop.f32.mrf.mxu2 }
  0xb3   : > { %4396 = vst [vmem:[#allocation14_spill] sm:$0xff] %v3860_v17 }
  0xb9   : > { %v3878_v31 = vpop.f32.mrf.mxu0  ;;  %v3880_v8 = vpop.f32.mrf.mxu1 }
  0xba   : > { %v3871_v19 = vpop.f32.mrf.mxu3  ;;  %v3889_v39 = vpop.f32.mrf.mxu2 }
  0xbb   : > { %4397 = vst [vmem:[#allocation15_spill] sm:$0xff] %v3871_v19 }
  0xbc   : > { %4399 = vst [vmem:[#allocation17_spill] sm:$0xff] %v3889_v39  ;;  %772 = vmatmul.bf16.gmra.mxu1 %v3875_v29  ;;  %1443 = vmatmul.bf16.gmra.mxu0 %v3024_v15 }
  0xbf   : > { %1187 = vmatmul.bf16.gmra.mxu3 %v3677_v61  ;;  %1025 = vmatmul.bf16.gmra.mxu2 %v3892_v2 }
  0xc1   : > { %v3904_v15 = vpop.f32.mrf.mxu0  ;;  %v3906_v27 = vpop.f32.mrf.mxu1 }
  0xc2   : > { %v3901_v35 = vpop.f32.mrf.mxu3  ;;  %v3911_v6 = vpop.f32.mrf.mxu2 }
  0xc3   : > { %4401 = vst [vmem:[#allocation19_spill] sm:$0xff] %v3901_v35  ;;  %v886_v35 = vsel %vm874_vm1, %v861_v54, %v862_v3  ;;  %v3083_v54 = vld [vmem:[%s4353_s1 + $0x190] sm:$0xff] }
  0xc4   : > { %4402 = vst [vmem:[#allocation20_spill] sm:$0xff] %v3911_v6  ;;  %1759 = vmatpush.bf16.msra.mxu2 %v3083_v54 }
  0xc9   : > { %v3922_v50 = vpop.f32.mrf.mxu0  ;;  %v3924_v2 = vpop.f32.mrf.mxu1 }
  0xca   : > { %v3915_v44 = vpop.f32.mrf.mxu3  ;;  %v3930_v19 = vpop.f32.mrf.mxu2 }
  0xcb   : > { %4403 = vst [vmem:[#allocation21_spill] sm:$0xff] %v3915_v44  ;;  %v3933_v44 = vpack.c.bf16 %v886_v35, %v887_v60  ;;  %v864_v35 = vrot.slane %v3360_v21, 1 }
  0xcc   : > { %4405 = vst [vmem:[#allocation23_spill] sm:$0xff] %v3930_v19  ;;  %777 = vmatmul.bf16.gmra.mxu1 %v3919_v38  ;;  %1448 = vmatmul.bf16.gmra.mxu0 %v3025_v49  ;;  %v863_v49 = vrot.slane %v3358_v20, 1 }
  0xcd   : > { %4406 = vst [vmem:[#allocation24_spill] sm:$0xff] %v3933_v44 }
  0xce   : > { %v884_v19 = vsel %vm874_vm1, %v863_v49, %v864_v35  ;;  %v885_v54 = vsel %vm874_vm1, %v862_v3, %v863_v49 }
  0xcf   : > { %1192 = vmatmul.bf16.gmra.mxu3 %v3738_v43  ;;  %1030 = vmatmul.bf16.gmra.mxu2 %v3933_v44  ;;  %v3026_v44 = vld [vmem:[%s3325_s5 + $0x38] sm:$0xff]  ;;  %v3091_v43 = vld [vmem:[%s4353_s1 + $0x1d0] sm:$0xff] }
  0xd0   : > { %1931 = vmatpush.bf16.msra.mxu3 %v3091_v43  ;;  %v3099_v43 = vld [vmem:[%s4353_s1 + $0x210] sm:$0xff] }
  0xd1   : > { %v3939_v18 = vpop.f32.mrf.mxu0  ;;  %v3941_v16 = vpop.f32.mrf.mxu1  ;;  %2103 = vmatpush.bf16.msra.mxu0 %v3099_v43 }
  0xd2   : > { %v3936_v12 = vpop.f32.mrf.mxu3  ;;  %v991_v13 = vpop.f32.mrf.mxu2 }
  0xd3   : > { %4407 = vst [vmem:[#allocation25_spill] sm:$0xff] %v3936_v12  ;;  %v3952_v12 = vpack.c.bf16 %v3379_v32, %v3696_v37  ;;  %v3075_v32 = vld [vmem:[%s4353_s1 + $0x150] sm:$0xff] }
  0xd4   : > { %1587 = vmatpush.bf16.msra.mxu1 %v3075_v32  ;;  %v3989_v32 = vpack.c.bf16 %v3384_v34, %v3381_v33 }
  0xd5   : > { %4409 = vst [vmem:[#allocation27_spill] sm:$0xff] %v3952_v12 }
  0xd6   : > { %4413 = vst [vmem:[#allocation31_spill] sm:$0xff] %v3989_v32 }
  0xd9   : > { %v3955_v38 = vpop.f32.mrf.mxu0  ;;  %v3957_v17 = vpop.f32.mrf.mxu1 }
  0xda   : > { %v3948_v60 = vpop.f32.mrf.mxu3  ;;  %v993_v37 = vpop.f32.mrf.mxu2 }
  0xdb   : > { %4408 = vst [vmem:[#allocation26_spill] sm:$0xff] %v3948_v60  ;;  %v3970_v60 = vpack.c.bf16 %v884_v19, %v885_v54  ;;  %v865_v19 = vrot.slane %v3363_v22, 1 }
  0xdc   : > { %782 = vmatmul.bf16.gmra.mxu1 %v3952_v12  ;;  %1453 = vmatmul.bf16.gmra.mxu0 %v3026_v44  ;;  %v866_v44 = vrot.slane %v3477_v4, 1 }
  0xdd   : > { %4410 = vst [vmem:[#allocation28_spill] sm:$0xff] %v3970_v60  ;;  %v883_v6 = vsel %vm874_vm1, %v864_v35, %v865_v19 }
  0xde   : > { %v882_v23 = vsel %vm874_vm1, %v865_v19, %v866_v44 }
  0xdf   : > { %1197 = vmatmul.bf16.gmra.mxu3 %v3466_v0  ;;  %1035 = vmatmul.bf16.gmra.mxu2 %v3970_v60  ;;  %v3027_v60 = vld [vmem:[%s3325_s5 + $0x40] sm:$0xff]  ;;  %v3998_v61 = vpack.c.bf16 %v882_v23, %v883_v6  ;;  %v3090_v23 = vld [vmem:[%s4353_s1 + $0x1c8] sm:$0xff] }
  0xe0   : > { %v3074_v6 = vld [vmem:[%s4353_s1 + $0x148] sm:$0xff]  ;;  %1932 = vmatpush.bf16.msra.mxu3 %v3090_v23 }
  0xe1   : > { %v3976_v49 = vpop.f32.mrf.mxu0  ;;  %v3978_v29 = vpop.f32.mrf.mxu1  ;;  %4414 = vst [vmem:[#allocation32_spill] sm:$0xff] %v3998_v61  ;;  %1588 = vmatpush.bf16.msra.mxu1 %v3074_v6  ;;  %v3098_v23 = vld [vmem:[%s4353_s1 + $0x208] sm:$0xff] }
  0xe2   : > { %v3973_v3 = vpop.f32.mrf.mxu3  ;;  %v996_v12 = vpop.f32.mrf.mxu2  ;;  %2104 = vmatpush.bf16.msra.mxu0 %v3098_v23 }
  0xe3   : > { %4411 = vst [vmem:[#allocation29_spill] sm:$0xff] %v3973_v3 }
  0xe9   : > { %v748_v3 = vpop.f32.mrf.mxu1  ;;  %v1419_v0 = vpop.f32.mrf.mxu0 }
  0xea   : > { %v3985_v54 = vpop.f32.mrf.mxu3  ;;  %v818_v43 = vadd.f32 %v748_v3, %v3848_v48  ;;  %v998_v39 = vpop.f32.mrf.mxu2  ;;  %v3082_v48 = vld [vmem:[%s4353_s1 + $0x188] sm:$0xff] }
  0xeb   : > { %4412 = vst [vmem:[#allocation30_spill] sm:$0xff] %v3985_v54  ;;  %1760 = vmatpush.bf16.msra.mxu2 %v3082_v48 }
  0xec   : > { %787 = vmatmul.bf16.gmra.mxu1 %v3989_v32  ;;  %1458 = vmatmul.bf16.gmra.mxu0 %v3027_v60  ;;  %v1061_v54 = vadd.f32 %v991_v13, %v818_v43  ;;  %v3028_v43 = vld [vmem:[%s3325_s5 + $0x48] sm:$0xff] }
  0xef   : > { %1202 = vmatmul.bf16.gmra.mxu3 %v3598_v28  ;;  %1040 = vmatmul.bf16.gmra.mxu2 %v3998_v61 }
  0xf1   : > { %v750_v1 = vpop.f32.mrf.mxu1  ;;  %v1421_v62 = vpop.f32.mrf.mxu0 }
  0xf2   : > { %v1163_v33 = vpop.f32.mrf.mxu3  ;;  %v819_v35 = vadd.f32 %v750_v1, %v3863_v59  ;;  %v1001_v13 = vpop.f32.mrf.mxu2  ;;  %v867_v1 = vrot.slane %v3480_v5, 1  ;;  %v868_v59 = vrot.slane %v3609_v24, 1 }
  0xf3   : > { %v1233_v34 = vadd.f32 %v1163_v33, %v1061_v54  ;;  %v4018_v54 = vpack.c.bf16 %v3358_v20, %v3504_v26 }
  0xf4   : > { %v1062_v3 = vadd.f32 %v993_v37, %v819_v35  ;;  %v881_v37 = vsel %vm874_vm1, %v866_v44, %v867_v1 }
  0xf5   : > { %v4012_v60 = vadd.f32 %v1419_v0, %v1233_v34  ;;  %v880_v0 = vsel %vm874_vm1, %v867_v1, %v868_v59 }
  0xf6   : > { %v4029_v26 = vpack.c.bf16 %v880_v0, %v881_v37  ;;  %v4043_v0 = vpack.c.bf16 %v3363_v22, %v3360_v21  ;;  %v3029_v37 = vld [vmem:[%s3325_s5 + $0x50] sm:$0xff] }
  0xf9   : > { %v753_v61 = vpop.f32.mrf.mxu1  ;;  %v1424_v32 = vpop.f32.mrf.mxu0 }
  0xfa   : > { %v1165_v19 = vpop.f32.mrf.mxu3  ;;  %v820_v34 = vadd.f32 %v753_v61, %v3878_v31  ;;  %v1003_v35 = vpop.f32.mrf.mxu2 }
  0xfb   : > { %v1234_v33 = vadd.f32 %v1165_v19, %v1062_v3  ;;  %v869_v19 = vrot.slane %v3612_v58, 1 }
  0xfc   : > { %792 = vmatmul.bf16.gmra.mxu1 %v4018_v54  ;;  %1463 = vmatmul.bf16.gmra.mxu0 %v3028_v43  ;;  %v1063_v20 = vadd.f32 %v996_v12, %v820_v34  ;;  %v870_v43 = vrot.slane %v3708_v7, 1 }
  0xfd   : > { %v4026_v48 = vadd.f32 %v1421_v62, %v1234_v33 }
  0xff   : > { %1207 = vmatmul.bf16.gmra.mxu3 %v3432_v53  ;;  %1045 = vmatmul.bf16.gmra.mxu2 %v4029_v26 }
 0x101   : > { %v755_v62 = vpop.f32.mrf.mxu1  ;;  %v1426_v31 = vpop.f32.mrf.mxu0 }
 0x102   : > { %v1168_v44 = vpop.f32.mrf.mxu3  ;;  %v821_v6 = vadd.f32 %v755_v62, %v3904_v15  ;;  %v1006_v3 = vpop.f32.mrf.mxu2  ;;  %v878_v15 = vsel %vm874_vm1, %v869_v19, %v870_v43  ;;  %v3081_v62 = vld [vmem:[%s4353_s1 + $0x180] sm:$0xff] }
 0x103   : > { %v1235_v61 = vadd.f32 %v1168_v44, %v1063_v20  ;;  %1761 = vmatpush.bf16.msra.mxu2 %v3081_v62 }
 0x104   : > { %v1064_v1 = vadd.f32 %v998_v39, %v821_v6 }
 0x105   : > { %v4037_v12 = vadd.f32 %v1424_v32, %v1235_v61  ;;  %v879_v32 = vsel %vm874_vm1, %v868_v59, %v869_v19  ;;  %v3073_v19 = vld [vmem:[%s4353_s1 + $0x140] sm:$0xff] }
 0x106   : > { %v4054_v22 = vpack.c.bf16 %v878_v15, %v879_v32  ;;  %1589 = vmatpush.bf16.msra.mxu1 %v3073_v19  ;;  %v4073_v32 = vpack.c.bf16 %v3480_v5, %v3477_v4 }
 0x109   : > { %v758_v20 = vpop.f32.mrf.mxu1  ;;  %v1429_v23 = vpop.f32.mrf.mxu0 }
 0x10a   : > { %v1170_v33 = vpop.f32.mrf.mxu3  ;;  %v822_v39 = vadd.f32 %v758_v20, %v3922_v50  ;;  %v1008_v44 = vpop.f32.mrf.mxu2  ;;  %v871_v20 = vrot.slane %v3336_v10, 1 }
 0x10b   : > { %v1236_v34 = vadd.f32 %v1170_v33, %v1064_v1 }
 0x10c   : > { %797 = vmatmul.bf16.gmra.mxu1 %v4043_v0  ;;  %1468 = vmatmul.bf16.gmra.mxu0 %v3029_v37  ;;  %v1065_v21 = vadd.f32 %v1001_v13, %v822_v39  ;;  %v3089_v13 = vld [vmem:[%s4353_s1 + $0x1c0] sm:$0xff]  ;;  %v3030_v39 = vld [vmem:[%s3325_s5 + $0x58] sm:$0xff] }
 0x10d   : > { %v4051_v61 = vadd.f32 %v1426_v31, %v1236_v34  ;;  %1933 = vmatpush.bf16.msra.mxu3 %v3089_v13 }
 0x10f   : > { %1212 = vmatmul.bf16.gmra.mxu3 %v3563_v57  ;;  %1050 = vmatmul.bf16.gmra.mxu2 %v4054_v22 }
 0x111   : > { %v760_v59 = vpop.f32.mrf.mxu1  ;;  %v1431_v31 = vpop.f32.mrf.mxu0 }
 0x112   : > { %v1173_v6 = vpop.f32.mrf.mxu3  ;;  %v823_v1 = vadd.f32 %v760_v59, %v3939_v18  ;;  %v1011_v33 = vpop.f32.mrf.mxu2 }
 0x113   : > { %v1237_v50 = vadd.f32 %v1173_v6, %v1065_v21  ;;  %v4415_v6 = vrot.slane %v3344_v14, 1 }
 0x114   : > { %v1066_v34 = vadd.f32 %v1003_v35, %v823_v1  ;;  %v877_v35 = vsel %vm874_vm1, %v870_v43, %v871_v20 }
 0x115   : > { %v4068_v37 = vadd.f32 %v1429_v23, %v1237_v50  ;;  %v876_v59 = vsel %vm874_vm1, %v871_v20, %v4415_v6  ;;  %v3097_v23 = vld [vmem:[%s4353_s1 + $0x200] sm:$0xff] }
 0x116   : > { %2105 = vmatpush.bf16.msra.mxu0 %v3097_v23  ;;  %v4089_v13 = vpack.c.bf16 %v876_v59, %v877_v35 }
 0x119   : > { %v763_v18 = vpop.f32.mrf.mxu1  ;;  %v1434_v62 = vpop.f32.mrf.mxu0 }
 0x11a   : > { %v1175_v15 = vpop.f32.mrf.mxu3  ;;  %v824_v50 = vadd.f32 %v763_v18, %v3955_v38  ;;  %v1013_v4 = vpop.f32.mrf.mxu2 }
 0x11b   : > { %v1238_v21 = vadd.f32 %v1175_v15, %v1066_v34 }
 0x11c   : > { %802 = vmatmul.bf16.gmra.mxu1 %v4073_v32  ;;  %1473 = vmatmul.bf16.gmra.mxu0 %v3030_v39  ;;  %v1067_v14 = vadd.f32 %v1006_v3, %v824_v50  ;;  %v4098_v3 = vpack.c.bf16 %v3612_v58, %v3609_v24  ;;  %v3031_v39 = vld [vmem:[%s3325_s5 + $0x60] sm:$0xff] }
 0x11d   : > { %v4086_v5 = vadd.f32 %v1431_v31, %v1238_v21 }
 0x11f   : > { %1217 = vmatmul.bf16.gmra.mxu3 %v3679_v42  ;;  %1055 = vmatmul.bf16.gmra.mxu2 %v4089_v13 }
 0x121   : > { %v765_v1 = vpop.f32.mrf.mxu1  ;;  %v1436_v19 = vpop.f32.mrf.mxu0 }
 0x122   : > { %v1178_v11 = vpop.f32.mrf.mxu3  ;;  %v825_v38 = vadd.f32 %v765_v1, %v3976_v49  ;;  %v1016_v34 = vpop.f32.mrf.mxu2  ;;  %v4112_v1 = vpack.c.bf16 %v3336_v10, %v3708_v7 }
 0x123   : > { %v1239_v43 = vadd.f32 %v1178_v11, %v1067_v14 }
 0x124   : > { %v1068_v20 = vadd.f32 %v1008_v44, %v825_v38 }
 0x125   : > { %v4094_v31 = vadd.f32 %v1434_v62, %v1239_v43 }
 0x129   : > { %v768_v18 = vpop.f32.mrf.mxu1  ;;  %v1439_v6 = vpop.f32.mrf.mxu0 }
 0x12a   : > { %v1180_v15 = vpop.f32.mrf.mxu3  ;;  %v826_v59 = vadd.f32 %v768_v18, %v3850_v36  ;;  %v1018_v35 = vpop.f32.mrf.mxu2 }
 0x12b   : > { %v1240_v21 = vadd.f32 %v1180_v15, %v1068_v20 }
 0x12c   : > { %807 = vmatmul.bf16.gmra.mxu1 %v4098_v3  ;;  %1478 = vmatmul.bf16.gmra.mxu0 %v3031_v39  ;;  %v1069_v49 = vadd.f32 %v1011_v33, %v826_v59  ;;  %v3032_v33 = vld [vmem:[%s3325_s5 + $0x68] sm:$0xff] }
 0x12d   : > { %v4102_v23 = vadd.f32 %v1436_v19, %v1240_v21 }
 0x12f   : > { %1222 = vmatmul.bf16.gmra.mxu3 %v3740_v47  ;;  %1762 = vmatmul.bf16.vlgmr.msra.gmra.mxu2 %v3675_v63 }
 0x131   : > { %v770_v58 = vpop.f32.mrf.mxu1  ;;  %v1441_v62 = vpop.f32.mrf.mxu0 }
 0x132   : > { %v1183_v44 = vpop.f32.mrf.mxu3  ;;  %v827_v50 = vadd.f32 %v770_v58, %v3865_v41  ;;  %v1021_v14 = vpop.f32.mrf.mxu2 }
 0x133   : > { %v1241_v24 = vadd.f32 %v1183_v44, %v1069_v49 }
 0x134   : > { %v1070_v11 = vadd.f32 %v1013_v4, %v827_v50 }
 0x135   : > { %v4108_v36 = vadd.f32 %v1439_v6, %v1241_v24 }
 0x139   : > { %v773_v38 = vpop.f32.mrf.mxu1  ;;  %v1444_v20 = vpop.f32.mrf.mxu0 }
 0x13a   : > { %v1185_v43 = vpop.f32.mrf.mxu3  ;;  %v828_v63 = vadd.f32 %v773_v38, %v3880_v8  ;;  %v1023_v15 = vpop.f32.mrf.mxu2 }
 0x13b   : > { %v1242_v19 = vadd.f32 %v1185_v43, %v1070_v11 }
 0x13c   : > { %812 = vmatmul.bf16.gmra.mxu1 %v4112_v1  ;;  %1483 = vmatmul.bf16.gmra.mxu0 %v3032_v33  ;;  %v1071_v41 = vadd.f32 %v1016_v34, %v828_v63 }
 0x13d   : > { %v4116_v39 = vadd.f32 %v1441_v62, %v1242_v19 }
 0x13f   : > { %1227 = vmatmul.bf16.gmra.mxu3 %v3428_v51  ;;  %1767 = vmatmul.bf16.gmra.mxu2 %v3736_v46 }
 0x141   : > { %v775_v7 = vpop.f32.mrf.mxu1  ;;  %v1446_v21 = vpop.f32.mrf.mxu0 }
 0x142   : > { %v1188_v4 = vpop.f32.mrf.mxu3  ;;  %v829_v18 = vadd.f32 %v775_v7, %v3906_v27  ;;  %v1026_v6 = vpop.f32.mrf.mxu2 }
 0x143   : > { %v1243_v10 = vadd.f32 %v1188_v4, %v1071_v41 }
 0x144   : > { %v1072_v8 = vadd.f32 %v1018_v35, %v829_v18 }
 0x145   : > { %v4122_v59 = vadd.f32 %v1444_v20, %v1243_v10 }
 0x149   : > { %v778_v24 = vpop.f32.mrf.mxu1  ;;  %v1449_v58 = vpop.f32.mrf.mxu0 }
 0x14a   : > { %v1190_v49 = vpop.f32.mrf.mxu3  ;;  %v830_v34 = vadd.f32 %v778_v24, %v3924_v2  ;;  %v1028_v62 = vpop.f32.mrf.mxu2 }
 0x14b   : > { %v1244_v44 = vadd.f32 %v1190_v49, %v1072_v8 }
 0x14c   : > { %1590 = vmatmul.bf16.vlgmr.msra.gmra.mxu1 %v3748_v25  ;;  %2106 = vmatmul.bf16.vlgmr.msra.gmra.mxu0 %v3770_v40  ;;  %v1073_v46 = vadd.f32 %v1021_v14, %v830_v34 }
 0x14d   : > { %v4125_v50 = vadd.f32 %v1446_v21, %v1244_v44 }
 0x14f   : > { %1934 = vmatmul.bf16.vlgmr.msra.gmra.mxu3 %v3561_v56  ;;  %1772 = vmatmul.bf16.gmra.mxu2 %v3430_v52 }
 0x151   : > { %v780_v11 = vpop.f32.mrf.mxu1  ;;  %v1451_v43 = vpop.f32.mrf.mxu0 }
 0x152   : > { %v1193_v27 = vpop.f32.mrf.mxu3  ;;  %v831_v33 = vadd.f32 %v780_v11, %v3941_v16  ;;  %v1031_v19 = vpop.f32.mrf.mxu2 }
 0x153   : > { %v1245_v35 = vadd.f32 %v1193_v27, %v1073_v46  ;;  %v4417_v27 = vld [vmem:[#allocation12_spill] sm:$0xff] }
 0x154   : > { %v1074_v38 = vadd.f32 %v1023_v15, %v831_v33  ;;  %v4419_v33 = vld [vmem:[#allocation17_spill] sm:$0xff] }
 0x155   : > { %v4132_v2 = vadd.f32 %v1449_v58, %v1245_v35  ;;  %v4418_v35 = vld [vmem:[#allocation7_spill] sm:$0xff] }
 0x159   : > { %v783_v41 = vpop.f32.mrf.mxu1  ;;  %v1454_v4 = vpop.f32.mrf.mxu0 }
 0x15a   : > { %v1195_v20 = vpop.f32.mrf.mxu3  ;;  %v832_v14 = vadd.f32 %v783_v41, %v3957_v17  ;;  %v1033_v10 = vpop.f32.mrf.mxu2 }
 0x15b   : > { %v1246_v63 = vadd.f32 %v1195_v20, %v1074_v38 }
 0x15c   : > { %1595 = vmatmul.bf16.gmra.mxu1 %v3770_v40  ;;  %2111 = vmatmul.bf16.gmra.mxu0 %v3785_v30  ;;  %v1075_v52 = vadd.f32 %v1026_v6, %v832_v14 }
 0x15d   : > { %v4135_v56 = vadd.f32 %v1451_v43, %v1246_v63 }
 0x15f   : > { %1939 = vmatmul.bf16.gmra.mxu3 %v3817_v45  ;;  %1777 = vmatmul.bf16.gmra.mxu2 %v3558_v55  ;;  %v4416_v55 = vld [vmem:[#allocation10_spill] sm:$0xff] }
 0x161   : > { %v785_v7 = vpop.f32.mrf.mxu1  ;;  %v1456_v21 = vpop.f32.mrf.mxu0 }
 0x162   : > { %v1198_v16 = vpop.f32.mrf.mxu3  ;;  %v833_v18 = vadd.f32 %v785_v7, %v3978_v29  ;;  %v1036_v8 = vpop.f32.mrf.mxu2  ;;  %v4421_v7 = vld [vmem:[#allocation11_spill] sm:$0xff] }
 0x163   : > { %v1247_v15 = vadd.f32 %v1198_v16, %v1075_v52  ;;  %v4420_v52 = vld [vmem:[#allocation20_spill] sm:$0xff] }
 0x164   : > { %v1076_v49 = vadd.f32 %v1028_v62, %v833_v18  ;;  %v4422_v18 = vld [vmem:[#allocation16_spill] sm:$0xff] }
 0x165   : > { %v4142_v17 = vadd.f32 %v1454_v4, %v1247_v15 }
 0x169   : > { %v788_v40 = vpop.f32.mrf.mxu1  ;;  %v1459_v58 = vpop.f32.mrf.mxu0 }
 0x16a   : > { %v1200_v44 = vpop.f32.mrf.mxu3  ;;  %v834_v6 = vadd.f32 %v788_v40, %v3867_v9  ;;  %v1038_v34 = vpop.f32.mrf.mxu2 }
 0x16b   : > { %v1248_v24 = vadd.f32 %v1200_v44, %v1076_v49  ;;  %v4423_v44 = vld [vmem:[#allocation9_spill] sm:$0xff] }
 0x16c   : > { %1600 = vmatmul.bf16.gmra.mxu1 %v3785_v30  ;;  %2116 = vmatmul.bf16.gmra.mxu0 %v4416_v55  ;;  %v1077_v46 = vadd.f32 %v1031_v19, %v834_v6 }
 0x16d   : > { %v4145_v45 = vadd.f32 %v1456_v21, %v1248_v24 }
 0x16f   : > { %1944 = vmatmul.bf16.gmra.mxu3 %v4417_v27  ;;  %1782 = vmatmul.bf16.gmra.mxu2 %v4418_v35 }
 0x171   : > { %v790_v11 = vpop.f32.mrf.mxu1  ;;  %v1461_v43 = vpop.f32.mrf.mxu0 }
 0x172   : > { %v1203_v29 = vpop.f32.mrf.mxu3  ;;  %v835_v38 = vadd.f32 %v790_v11, %v4419_v33  ;;  %v1041_v20 = vpop.f32.mrf.mxu2 }
 0x173   : > { %v1249_v62 = vadd.f32 %v1203_v29, %v1077_v46 }
 0x174   : > { %v1078_v63 = vadd.f32 %v1033_v10, %v835_v38 }
 0x175   : > { %v4152_v9 = vadd.f32 %v1459_v58, %v1249_v62  ;;  %v4424_v58 = vld [vmem:[#allocation23_spill] sm:$0xff] }
 0x179   : > { %v793_v30 = vpop.f32.mrf.mxu1  ;;  %v1464_v14 = vpop.f32.mrf.mxu0 }
 0x17a   : > { %v1205_v41 = vpop.f32.mrf.mxu3  ;;  %v836_v19 = vadd.f32 %v793_v30, %v4420_v52  ;;  %v1043_v16 = vpop.f32.mrf.mxu2 }
 0x17b   : > { %v1250_v4 = vadd.f32 %v1205_v41, %v1078_v63  ;;  %v4426_v63 = vld [vmem:[#allocation13_spill] sm:$0xff] }
 0x17c   : > { %1605 = vmatmul.bf16.gmra.mxu1 %v4416_v55  ;;  %2121 = vmatmul.bf16.gmra.mxu0 %v4421_v7  ;;  %v1079_v21 = vadd.f32 %v1036_v8, %v836_v19 }
 0x17d   : > { %v4155_v15 = vadd.f32 %v1461_v43, %v1250_v4  ;;  %v4425_v43 = vld [vmem:[#allocation14_spill] sm:$0xff] }
 0x17e   : > { %v4427_v4 = vld [vmem:[#allocation22_spill] sm:$0xff] }
 0x17f   : > { %1949 = vmatmul.bf16.gmra.mxu3 %v4422_v18  ;;  %1787 = vmatmul.bf16.gmra.mxu2 %v4423_v44 }
 0x181   : > { %v795_v24 = vpop.f32.mrf.mxu1  ;;  %v1466_v40 = vpop.f32.mrf.mxu0 }
 0x182   : > { %v1208_v49 = vpop.f32.mrf.mxu3  ;;  %v837_v6 = vadd.f32 %v795_v24, %v4424_v58  ;;  %v1046_v46 = vpop.f32.mrf.mxu2 }
 0x183   : > { %v1251_v10 = vadd.f32 %v1208_v49, %v1079_v21  ;;  %v4429_v21 = vld [vmem:[#allocation15_spill] sm:$0xff] }
 0x184   : > { %v1080_v29 = vadd.f32 %v1038_v34, %v837_v6  ;;  %v4430_v6 = vld [vmem:[#allocation19_spill] sm:$0xff] }
 0x185   : > { %v4162_v27 = vadd.f32 %v1464_v14, %v1251_v10  ;;  %v4428_v14 = vld [vmem:[#allocation4_spill] sm:$0xff] }
 0x189   : > { %v798_v55 = vpop.f32.mrf.mxu1  ;;  %v1469_v11 = vpop.f32.mrf.mxu0 }
 0x18a   : > { %v1210_v35 = vpop.f32.mrf.mxu3  ;;  %v838_v8 = vadd.f32 %v798_v55, %v4425_v43  ;;  %v1048_v33 = vpop.f32.mrf.mxu2  ;;  %v4432_v43 = vld [vmem:[#allocation27_spill] sm:$0xff] }
 0x18b   : > { %v1252_v62 = vadd.f32 %v1210_v35, %v1080_v29 }
 0x18c   : > { %1610 = vmatmul.bf16.gmra.mxu1 %v4421_v7  ;;  %2126 = vmatmul.bf16.gmra.mxu0 %v4426_v63  ;;  %v1081_v41 = vadd.f32 %v1041_v20, %v838_v8 }
 0x18d   : > { %v4165_v38 = vadd.f32 %v1466_v40, %v1252_v62  ;;  %v4431_v62 = vld [vmem:[#allocation18_spill] sm:$0xff] }
 0x18f   : > { %1954 = vmatmul.bf16.gmra.mxu3 %v4427_v4  ;;  %1792 = vmatmul.bf16.gmra.mxu2 %v4428_v14  ;;  %v4433_v4 = vld [vmem:[#allocation21_spill] sm:$0xff] }
 0x191   : > { %v800_v52 = vpop.f32.mrf.mxu1  ;;  %v1471_v19 = vpop.f32.mrf.mxu0 }
 0x192   : > { %v1213_v30 = vpop.f32.mrf.mxu3  ;;  %v839_v18 = vadd.f32 %v800_v52, %v4429_v21  ;;  %v1051_v49 = vpop.f32.mrf.mxu2 }
 0x193   : > { %v1253_v34 = vadd.f32 %v1213_v30, %v1081_v41 }
 0x194   : > { %v1082_v10 = vadd.f32 %v1043_v16, %v839_v18 }
 0x195   : > { %v4172_v44 = vadd.f32 %v1469_v11, %v1253_v34 }
 0x199   : > { %v803_v7 = vpop.f32.mrf.mxu1  ;;  %v1474_v58 = vpop.f32.mrf.mxu0 }
 0x19a   : > { %v1215_v24 = vpop.f32.mrf.mxu3  ;;  %v840_v20 = vadd.f32 %v803_v7, %v4430_v6  ;;  %v1053_v29 = vpop.f32.mrf.mxu2  ;;  %v4436_v6 = vld [vmem:[#allocation31_spill] sm:$0xff] }
 0x19b   : > { %v1254_v40 = vadd.f32 %v1215_v24, %v1082_v10  ;;  %v4434_v10 = vld [vmem:[#allocation25_spill] sm:$0xff] }
 0x19c   : > { %1615 = vmatmul.bf16.gmra.mxu1 %v4426_v63  ;;  %2131 = vmatmul.bf16.gmra.mxu0 %v4431_v62  ;;  %v1083_v55 = vadd.f32 %v1046_v46, %v840_v20 }
 0x19d   : > { %v4175_v35 = vadd.f32 %v1471_v19, %v1254_v40 }
 0x19f   : > { %1959 = vmatmul.bf16.gmra.mxu3 %v4432_v43  ;;  %1797 = vmatmul.bf16.gmra.mxu2 %v3598_v28  ;;  %v4435_v28 = vld [vmem:[#allocation24_spill] sm:$0xff]  ;;  %v4437_v43 = vld [vmem:[#allocation26_spill] sm:$0xff] }
 0x1a1   : > { %v805_v11 = vpop.f32.mrf.mxu1  ;;  %v1476_v41 = vpop.f32.mrf.mxu0 }
 0x1a2   : > { %v1218_v8 = vpop.f32.mrf.mxu3  ;;  %v841_v30 = vadd.f32 %v805_v11, %v4433_v4  ;;  %v1056_v14 = vpop.f32.mrf.mxu2 }
 0x1a3   : > { %v1255_v16 = vadd.f32 %v1218_v8, %v1083_v55 }
 0x1a4   : > { %v1084_v52 = vadd.f32 %v1048_v33, %v841_v30 }
 0x1a5   : > { %v4182_v34 = vadd.f32 %v1474_v58, %v1255_v16 }
 0x1a9   : > { %v808_v63 = vpop.f32.mrf.mxu1  ;;  %v1479_v18 = vpop.f32.mrf.mxu0 }
 0x1aa   : > { %v1220_v19 = vpop.f32.mrf.mxu3  ;;  %v842_v46 = vadd.f32 %v808_v63, %v4434_v10  ;;  %v1058_v24 = vpop.f32.mrf.mxu2 }
 0x1ab   : > { %v1256_v21 = vadd.f32 %v1220_v19, %v1084_v52  ;;  %v4438_v19 = vld [vmem:[#allocation29_spill] sm:$0xff] }
 0x1ac   : > { %1620 = vmatmul.bf16.gmra.mxu1 %v4431_v62  ;;  %2136 = vmatmul.bf16.gmra.mxu0 %v4435_v28  ;;  %v1085_v7 = vadd.f32 %v1051_v49, %v842_v46 }
 0x1ad   : > { %v4185_v40 = vadd.f32 %v1476_v41, %v1256_v21 }
 0x1af   : > { %1964 = vmatmul.bf16.gmra.mxu3 %v4436_v6  ;;  %1802 = vmatmul.bf16.gmra.mxu2 %v3432_v53  ;;  %v4439_v53 = vld [vmem:[#allocation28_spill] sm:$0xff]  ;;  %v4440_v6 = vld [vmem:[#allocation30_spill] sm:$0xff] }
 0x1b1   : > { %v810_v58 = vpop.f32.mrf.mxu1  ;;  %v1481_v55 = vpop.f32.mrf.mxu0 }
 0x1b2   : > { %v1223_v20 = vpop.f32.mrf.mxu3  ;;  %v843_v8 = vadd.f32 %v810_v58, %v4437_v43  ;;  %v1763_v16 = vpop.f32.mrf.mxu2 }
 0x1b3   : > { %v1257_v33 = vadd.f32 %v1223_v20, %v1085_v7 }
 0x1b4   : > { %v1086_v41 = vadd.f32 %v1053_v29, %v843_v8 }
 0x1b5   : > { %v4192_v11 = vadd.f32 %v1479_v18, %v1257_v33 }
 0x1b9   : > { %v813_v62 = vpop.f32.mrf.mxu1  ;;  %v1484_v52 = vpop.f32.mrf.mxu0 }
 0x1ba   : > { %v1225_v4 = vpop.f32.mrf.mxu3  ;;  %v844_v49 = vadd.f32 %v813_v62, %v4438_v19  ;;  %v1765_v21 = vpop.f32.mrf.mxu2 }
 0x1bb   : > { %v1258_v30 = vadd.f32 %v1225_v4, %v1086_v41 }
 0x1bc   : > { %1625 = vmatmul.bf16.gmra.mxu1 %v4435_v28  ;;  %2141 = vmatmul.bf16.gmra.mxu0 %v4439_v53  ;;  %v1087_v10 = vadd.f32 %v1056_v14, %v844_v49 }
 0x1bd   : > { %v4195_v63 = vadd.f32 %v1481_v55, %v1258_v30 }
 0x1bf   : > { %1969 = vmatmul.bf16.gmra.mxu3 %v4018_v54  ;;  %1807 = vmatmul.bf16.gmra.mxu2 %v3563_v57  ;;  %v4441_v57 = vld [vmem:[#allocation32_spill] sm:$0xff] }
 0x1c1   : > { %v815_v18 = vpop.f32.mrf.mxu1  ;;  %v1486_v7 = vpop.f32.mrf.mxu0 }
 0x1c2   : > { %v1228_v46 = vpop.f32.mrf.mxu3  ;;  %v845_v20 = vadd.f32 %v815_v18, %v4440_v6  ;;  %v1768_v33 = vpop.f32.mrf.mxu2 }
 0x1c3   : > { %v1259_v29 = vadd.f32 %v1228_v46, %v1087_v10  ;;  %v4215_v46 = vld [vmem:[%s4354_s2] ss:$0 sm:$0xff] }
 0x1c4   : > { %v1088_v55 = vadd.f32 %v1058_v24, %v845_v20 }
 0x1c5   : > { %v4202_v58 = vadd.f32 %v1484_v52, %v1259_v29 }
 0x1c9   : > { %v1591_v28 = vpop.f32.mrf.mxu1  ;;  %v2107_v41 = vpop.f32.mrf.mxu0 }
 0x1ca   : > { %v1230_v43 = vpop.f32.mrf.mxu3  ;;  %v1661_v14 = vadd.f32 %v1591_v28, %v4012_v60  ;;  %v1770_v4 = vpop.f32.mrf.mxu2 }
 0x1cb   : > { %v1260_v8 = vadd.f32 %v1230_v43, %v1088_v55 }
 0x1cc   : > { %1630 = vmatmul.bf16.gmra.mxu1 %v4439_v53  ;;  %2146 = vmatmul.bf16.gmra.mxu0 %v4441_v57  ;;  %v1833_v30 = vadd.f32 %v1763_v16, %v1661_v14 }
 0x1cd   : > { %v4205_v54 = vadd.f32 %v1486_v7, %v1260_v8 }
 0x1cf   : > { %1974 = vmatmul.bf16.gmra.mxu3 %v4043_v0  ;;  %1812 = vmatmul.bf16.gmra.mxu2 %v3679_v42  ;;  %v4221_v42 = vld [vmem:[%s4355_s3] ss:$0 sm:$0xff] }
 0x1d1   : > { %v1593_v52 = vpop.f32.mrf.mxu1  ;;  %v2109_v19 = vpop.f32.mrf.mxu0 }
 0x1d2   : > { %v1935_v62 = vpop.f32.mrf.mxu3  ;;  %v1662_v49 = vadd.f32 %v1593_v52, %v4026_v48  ;;  %v1773_v10 = vpop.f32.mrf.mxu2 }
 0x1d3   : > { %v2005_v24 = vadd.f32 %v1935_v62, %v1833_v30 }
 0x1d4   : > { %v1834_v53 = vadd.f32 %v1765_v21, %v1662_v49 }
 0x1d5   : > { %v2177_v60 = vadd.f32 %v2107_v41, %v2005_v24 }
 0x1d7   : > { %v2268_v0 = vmul.f32 %v4215_v46, %v2177_v60 }
 0x1d9   : > { %v1596_v18 = vpop.f32.mrf.mxu1  ;;  %v2112_v7 = vpop.f32.mrf.mxu0  ;;  %v2300_v21 = vadd.f32 %v4221_v42, %v2268_v0 }
 0x1da   : > { %v1937_v29 = vpop.f32.mrf.mxu3  ;;  %v1663_v6 = vadd.f32 %v1596_v18, %v4037_v12  ;;  %v1775_v20 = vpop.f32.mrf.mxu2 }
 0x1db   : > { %v2006_v16 = vadd.f32 %v1937_v29, %v1834_v53  ;;  %v2328_v41 = vmax.f32 %v2300_v21, 0.0 }
 0x1dc   : > { %1635 = vmatmul.bf16.gmra.mxu1 %v4441_v57  ;;  %2151 = vmatmul.bf16.gmra.mxu0 %v4029_v26  ;;  %v1835_v8 = vadd.f32 %v1768_v33, %v1663_v6 }
 0x1dd   : > { %v2178_v48 = vadd.f32 %v2109_v19, %v2006_v16 }
 0x1df   : > { %v2269_v55 = vmul.f32 %v4215_v46, %v2178_v48  ;;  %1979 = vmatmul.bf16.gmra.mxu3 %v4073_v32  ;;  %1817 = vmatmul.bf16.gmra.mxu2 %v3740_v47 }
 0x1e1   : > { %v2301_v43 = vadd.f32 %v4221_v42, %v2269_v55  ;;  %v1598_v30 = vpop.f32.mrf.mxu1  ;;  %v2114_v62 = vpop.f32.mrf.mxu0 }
 0x1e2   : > { %v1940_v28 = vpop.f32.mrf.mxu3  ;;  %v1664_v32 = vadd.f32 %v1598_v30, %v4051_v61  ;;  %v1778_v24 = vpop.f32.mrf.mxu2 }
 0x1e3   : > { %v2329_v12 = vmax.f32 %v2301_v43, 0.0  ;;  %v2007_v14 = vadd.f32 %v1940_v28, %v1835_v8 }
 0x1e4   : > { %v1836_v52 = vadd.f32 %v1770_v4, %v1664_v32 }
 0x1e5   : > { %v3108_v57 = vpack.c.bf16 %v2329_v12, %v2328_v41  ;;  %v2179_v33 = vadd.f32 %v2112_v7, %v2007_v14 }
 0x1e7   : > { %3109 = vst [vmem:[%s4236_s7] sm:$0xff] %v3108_v57   ;;  %v2270_v19 = vmul.f32 %v4215_v46, %v2179_v33 }
 0x1e9   : > { %v1601_v60 = vpop.f32.mrf.mxu1  ;;  %v2117_v53 = vpop.f32.mrf.mxu0  ;;  %v2302_v61 = vadd.f32 %v4221_v42, %v2270_v19  ;;  %v4442_v19 = vld [vmem:[#allocation5_spill] sm:$0xff] }
 0x1ea   : > { %v1942_v47 = vpop.f32.mrf.mxu3  ;;  %v1665_v0 = vadd.f32 %v1601_v60, %v4068_v37  ;;  %v1780_v16 = vpop.f32.mrf.mxu2 }
 0x1eb   : > { %v2008_v49 = vadd.f32 %v1942_v47, %v1836_v52  ;;  %v2330_v6 = vmax.f32 %v2302_v61, 0.0 }
 0x1ec   : > { %1640 = vmatmul.bf16.gmra.mxu1 %v4029_v26  ;;  %2156 = vmatmul.bf16.gmra.mxu0 %v4054_v22  ;;  %v1837_v7 = vadd.f32 %v1773_v10, %v1665_v0 }
 0x1ed   : > { %v2180_v29 = vadd.f32 %v2114_v62, %v2008_v49 }
 0x1ef   : > { %v2271_v18 = vmul.f32 %v4215_v46, %v2180_v29  ;;  %1984 = vmatmul.bf16.gmra.mxu3 %v4098_v3  ;;  %1822 = vmatmul.bf16.gmra.mxu2 %v3428_v51 }
 0x1f1   : > { %v2303_v4 = vadd.f32 %v4221_v42, %v2271_v18  ;;  %v1603_v55 = vpop.f32.mrf.mxu1  ;;  %v2119_v26 = vpop.f32.mrf.mxu0 }
 0x1f2   : > { %v1945_v48 = vpop.f32.mrf.mxu3  ;;  %v1666_v8 = vadd.f32 %v1603_v55, %v4086_v5  ;;  %v1783_v28 = vpop.f32.mrf.mxu2 }
 0x1f3   : > { %v2331_v37 = vmax.f32 %v2303_v4, 0.0  ;;  %v2009_v21 = vadd.f32 %v1945_v48, %v1837_v7 }
 0x1f4   : > { %v1838_v12 = vadd.f32 %v1775_v20, %v1666_v8 }
 0x1f5   : > { %v3113_v43 = vpack.c.bf16 %v2331_v37, %v2330_v6  ;;  %v2181_v41 = vadd.f32 %v2117_v53, %v2009_v21 }
 0x1f7   : > { %3175 = vst [vmem:[%s4236_s7 + $0x8] sm:$0xff] %v3113_v43   ;;  %v2272_v3 = vmul.f32 %v4215_v46, %v2181_v41 }
 0x1f9   : > { %v1606_v10 = vpop.f32.mrf.mxu1  ;;  %v2122_v62 = vpop.f32.mrf.mxu0  ;;  %v2304_v5 = vadd.f32 %v4221_v42, %v2272_v3 }
 0x1fa   : > { %v1947_v14 = vpop.f32.mrf.mxu3  ;;  %v1667_v51 = vadd.f32 %v1606_v10, %v4094_v31  ;;  %v1785_v32 = vpop.f32.mrf.mxu2 }
 0x1fb   : > { %v2010_v30 = vadd.f32 %v1947_v14, %v1838_v12  ;;  %v2332_v49 = vmax.f32 %v2304_v5, 0.0 }
 0x1fc   : > { %1645 = vmatmul.bf16.gmra.mxu1 %v4054_v22  ;;  %2161 = vmatmul.bf16.gmra.mxu0 %v4089_v13  ;;  %v1839_v52 = vadd.f32 %v1778_v24, %v1667_v51 }
 0x1fd   : > { %v2182_v57 = vadd.f32 %v2119_v26, %v2010_v30  ;;  %v4443_v26 = vld [vmem:[#allocation8_spill] sm:$0xff] }
 0x1ff   : > { %v2273_v33 = vmul.f32 %v4215_v46, %v2182_v57  ;;  %1989 = vmatmul.bf16.gmra.mxu3 %v4112_v1  ;;  %1827 = vmatmul.bf16.gmra.mxu2 %v4442_v19 }
 0x201   : > { %v2305_v20 = vadd.f32 %v4221_v42, %v2273_v33  ;;  %v1608_v53 = vpop.f32.mrf.mxu1  ;;  %v2124_v22 = vpop.f32.mrf.mxu0 }
 0x202   : > { %v1950_v47 = vpop.f32.mrf.mxu3  ;;  %v1668_v0 = vadd.f32 %v1608_v53, %v4102_v23  ;;  %v1788_v61 = vpop.f32.mrf.mxu2 }
 0x203   : > { %v2333_v31 = vmax.f32 %v2305_v20, 0.0  ;;  %v2011_v60 = vadd.f32 %v1950_v47, %v1839_v52 }
 0x204   : > { %v1840_v4 = vadd.f32 %v1780_v16, %v1668_v0  ;;  %v4444_v16 = vld [vmem:[#allocation6_spill] sm:$0xff] }
 0x205   : > { %v3118_v29 = vpack.c.bf16 %v2333_v31, %v2332_v49  ;;  %v2183_v18 = vadd.f32 %v2122_v62, %v2011_v60 }
 0x207   : > { %3176 = vst [vmem:[%s4236_s7 + $0x10] sm:$0xff] %v3118_v29   ;;  %v2274_v1 = vmul.f32 %v4215_v46, %v2183_v18 }
 0x209   : > { %v1611_v24 = vpop.f32.mrf.mxu1  ;;  %v2127_v6 = vpop.f32.mrf.mxu0  ;;  %v2306_v23 = vadd.f32 %v4221_v42, %v2274_v1 }
 0x20a   : > { %v1952_v7 = vpop.f32.mrf.mxu3  ;;  %v1669_v21 = vadd.f32 %v1611_v24, %v4108_v36  ;;  %v1790_v55 = vpop.f32.mrf.mxu2 }
 0x20b   : > { %v2012_v48 = vadd.f32 %v1952_v7, %v1840_v4  ;;  %v2334_v14 = vmax.f32 %v2306_v23, 0.0 }
 0x20c   : > { %1650 = vmatmul.bf16.gmra.mxu1 %v4089_v13  ;;  %2166 = vmatmul.bf16.gmra.mxu0 %v4443_v26  ;;  %v1841_v41 = vadd.f32 %v1783_v28, %v1669_v21 }
 0x20d   : > { %v2184_v37 = vadd.f32 %v2124_v22, %v2012_v48 }
 0x20f   : > { %v2275_v43 = vmul.f32 %v4215_v46, %v2184_v37  ;;  %1994 = vmatmul.bf16.gmra.mxu3 %v4444_v16 }
 0x211   : > { %v2307_v8 = vadd.f32 %v4221_v42, %v2275_v43  ;;  %v1613_v36 = vpop.f32.mrf.mxu1  ;;  %v2129_v10 = vpop.f32.mrf.mxu0 }
 0x212   : > { %v1955_v12 = vpop.f32.mrf.mxu3  ;;  %v1670_v13 = vadd.f32 %v1613_v36, %v4116_v39  ;;  %v1793_v57 = vpop.f32.mrf.mxu2 }
 0x213   : > { %v2335_v3 = vmax.f32 %v2307_v8, 0.0  ;;  %v2013_v30 = vadd.f32 %v1955_v12, %v1841_v41 }
 0x214   : > { %v1842_v5 = vadd.f32 %v1785_v32, %v1670_v13  ;;  %v4445_v32 = vld [vmem:[#allocation3_spill] sm:$0xff] }
 0x215   : > { %v3123_v62 = vpack.c.bf16 %v2335_v3, %v2334_v14  ;;  %v2185_v51 = vadd.f32 %v2127_v6, %v2013_v30 }
 0x217   : > { %3177 = vst [vmem:[%s4236_s7 + $0x18] sm:$0xff] %v3123_v62   ;;  %v2276_v20 = vmul.f32 %v4215_v46, %v2185_v51 }
 0x219   : > { %v1616_v47 = vpop.f32.mrf.mxu1  ;;  %v2132_v19 = vpop.f32.mrf.mxu0  ;;  %v2308_v39 = vadd.f32 %v4221_v42, %v2276_v20 }
 0x21a   : > { %v1957_v33 = vpop.f32.mrf.mxu3  ;;  %v1671_v49 = vadd.f32 %v1616_v47, %v4122_v59  ;;  %v1795_v31 = vpop.f32.mrf.mxu2 }
 0x21b   : > { %v2014_v52 = vadd.f32 %v1957_v33, %v1842_v5  ;;  %v2336_v0 = vmax.f32 %v2308_v39, 0.0 }
 0x21c   : > { %1655 = vmatmul.bf16.gmra.mxu1 %v4443_v26  ;;  %2171 = vmatmul.bf16.gmra.mxu0 %v3748_v25  ;;  %v1843_v22 = vadd.f32 %v1788_v61, %v1671_v49 }
 0x21d   : > { %v2186_v28 = vadd.f32 %v2129_v10, %v2014_v52 }
 0x21f   : > { %v2277_v60 = vmul.f32 %v4215_v46, %v2186_v28  ;;  %1999 = vmatmul.bf16.gmra.mxu3 %v4445_v32 }
 0x221   : > { %v2309_v53 = vadd.f32 %v4221_v42, %v2277_v60  ;;  %v1618_v59 = vpop.f32.mrf.mxu1  ;;  %v2134_v7 = vpop.f32.mrf.mxu0 }
 0x222   : > { %v1960_v29 = vpop.f32.mrf.mxu3  ;;  %v1672_v48 = vadd.f32 %v1618_v59, %v4125_v50  ;;  %v1798_v24 = vpop.f32.mrf.mxu2 }
 0x223   : > { %v2337_v18 = vmax.f32 %v2309_v53, 0.0  ;;  %v2015_v4 = vadd.f32 %v1960_v29, %v1843_v22 }
 0x224   : > { %v1844_v6 = vadd.f32 %v1790_v55, %v1672_v48 }
 0x225   : > { %v3128_v1 = vpack.c.bf16 %v2337_v18, %v2336_v0  ;;  %v2187_v25 = vadd.f32 %v2132_v19, %v2015_v4 }
 0x227   : > { %3178 = vst [vmem:[%s4236_s7 + $0x20] sm:$0xff] %v3128_v1   ;;  %v2278_v21 = vmul.f32 %v4215_v46, %v2187_v25 }
 0x229   : > { %v1621_v23 = vpop.f32.mrf.mxu1  ;;  %v2137_v43 = vpop.f32.mrf.mxu0  ;;  %v2310_v8 = vadd.f32 %v4221_v42, %v2278_v21 }
 0x22a   : > { %v1962_v37 = vpop.f32.mrf.mxu3  ;;  %v1673_v16 = vadd.f32 %v1621_v23, %v4132_v2  ;;  %v1800_v12 = vpop.f32.mrf.mxu2 }
 0x22b   : > { %v2016_v26 = vadd.f32 %v1962_v37, %v1844_v6  ;;  %v2338_v55 = vmax.f32 %v2310_v8, 0.0 }
 0x22c   : > { %v1845_v14 = vadd.f32 %v1793_v57, %v1673_v16 }
 0x22d   : > { %v2188_v61 = vadd.f32 %v2134_v7, %v2016_v26 }
 0x22f   : > { %v2279_v41 = vmul.f32 %v4215_v46, %v2188_v61 }
 0x231   : > { %v2311_v50 = vadd.f32 %v4221_v42, %v2279_v41  ;;  %v1623_v10 = vpop.f32.mrf.mxu1  ;;  %v2139_v62 = vpop.f32.mrf.mxu0 }
 0x232   : > { %v1965_v3 = vpop.f32.mrf.mxu3  ;;  %v1674_v51 = vadd.f32 %v1623_v10, %v4135_v56  ;;  %v1803_v20 = vpop.f32.mrf.mxu2 }
 0x233   : > { %v2339_v30 = vmax.f32 %v2311_v50, 0.0  ;;  %v2017_v36 = vadd.f32 %v1965_v3, %v1845_v14 }
 0x234   : > { %v1846_v2 = vadd.f32 %v1795_v31, %v1674_v51 }
 0x235   : > { %v3133_v13 = vpack.c.bf16 %v2339_v30, %v2338_v55  ;;  %v2189_v5 = vadd.f32 %v2137_v43, %v2017_v36 }
 0x237   : > { %3179 = vst [vmem:[%s4236_s7 + $0x28] sm:$0xff] %v3133_v13   ;;  %v2280_v52 = vmul.f32 %v4215_v46, %v2189_v5 }
 0x239   : > { %v1626_v19 = vpop.f32.mrf.mxu1  ;;  %v2142_v28 = vpop.f32.mrf.mxu0  ;;  %v2312_v39 = vadd.f32 %v4221_v42, %v2280_v52 }
 0x23a   : > { %v1967_v33 = vpop.f32.mrf.mxu3  ;;  %v1675_v49 = vadd.f32 %v1626_v19, %v4142_v17  ;;  %v1805_v4 = vpop.f32.mrf.mxu2 }
 0x23b   : > { %v2018_v47 = vadd.f32 %v1967_v33, %v1846_v2  ;;  %v2340_v31 = vmax.f32 %v2312_v39, 0.0 }
 0x23c   : > { %v1847_v32 = vadd.f32 %v1798_v24, %v1675_v49 }
 0x23d   : > { %v2190_v57 = vadd.f32 %v2139_v62, %v2018_v47 }
 0x23f   : > { %v2281_v60 = vmul.f32 %v4215_v46, %v2190_v57 }
 0x241   : > { %v2313_v56 = vadd.f32 %v4221_v42, %v2281_v60  ;;  %v1628_v0 = vpop.f32.mrf.mxu1  ;;  %v2144_v18 = vpop.f32.mrf.mxu0 }
 0x242   : > { %v1970_v53 = vpop.f32.mrf.mxu3  ;;  %v1676_v7 = vadd.f32 %v1628_v0, %v4145_v45  ;;  %v1808_v23 = vpop.f32.mrf.mxu2 }
 0x243   : > { %v2341_v22 = vmax.f32 %v2313_v56, 0.0  ;;  %v2019_v29 = vadd.f32 %v1970_v53, %v1847_v32 }
 0x244   : > { %v1848_v17 = vadd.f32 %v1800_v12, %v1676_v7 }
 0x245   : > { %v3138_v59 = vpack.c.bf16 %v2341_v22, %v2340_v31  ;;  %v2191_v1 = vadd.f32 %v2142_v28, %v2019_v29 }
 0x247   : > { %3180 = vst [vmem:[%s4236_s7 + $0x30] sm:$0xff] %v3138_v59   ;;  %v2282_v25 = vmul.f32 %v4215_v46, %v2191_v1 }
 0x249   : > { %v1631_v37 = vpop.f32.mrf.mxu1  ;;  %v2147_v21 = vpop.f32.mrf.mxu0  ;;  %v2314_v43 = vadd.f32 %v4221_v42, %v2282_v25 }
 0x24a   : > { %v1972_v48 = vpop.f32.mrf.mxu3  ;;  %v1677_v26 = vadd.f32 %v1631_v37, %v4152_v9  ;;  %v1810_v9 = vpop.f32.mrf.mxu2 }
 0x24b   : > { %v2020_v6 = vadd.f32 %v1972_v48, %v1848_v17  ;;  %v2342_v41 = vmax.f32 %v2314_v43, 0.0 }
 0x24c   : > { %v1849_v16 = vadd.f32 %v1803_v20, %v1677_v26 }
 0x24d   : > { %v2192_v24 = vadd.f32 %v2144_v18, %v2020_v6 }
 0x24f   : > { %v2283_v61 = vmul.f32 %v4215_v46, %v2192_v24 }
 0x251   : > { %v2315_v45 = vadd.f32 %v4221_v42, %v2283_v61  ;;  %v1633_v14 = vpop.f32.mrf.mxu1  ;;  %v2149_v3 = vpop.f32.mrf.mxu0 }
 0x252   : > { %v1975_v8 = vpop.f32.mrf.mxu3  ;;  %v1678_v30 = vadd.f32 %v1633_v14, %v4155_v15  ;;  %v1813_v57 = vpop.f32.mrf.mxu2 }
 0x253   : > { %v2343_v12 = vmax.f32 %v2315_v45, 0.0  ;;  %v2021_v50 = vadd.f32 %v1975_v8, %v1849_v16 }
 0x254   : > { %v1850_v10 = vadd.f32 %v1805_v4, %v1678_v30 }
 0x255   : > { %v3143_v55 = vpack.c.bf16 %v2343_v12, %v2342_v41  ;;  %v2193_v36 = vadd.f32 %v2147_v21, %v2021_v50 }
 0x257   : > { %3181 = vst [vmem:[%s4236_s7 + $0x38] sm:$0xff] %v3143_v55   ;;  %v2284_v13 = vmul.f32 %v4215_v46, %v2193_v36 }
 0x259   : > { %v1636_v5 = vpop.f32.mrf.mxu1  ;;  %v2152_v2 = vpop.f32.mrf.mxu0  ;;  %v2316_v52 = vadd.f32 %v4221_v42, %v2284_v13 }
 0x25a   : > { %v1977_v62 = vpop.f32.mrf.mxu3  ;;  %v1679_v20 = vadd.f32 %v1636_v5, %v4162_v27  ;;  %v1815_v7 = vpop.f32.mrf.mxu2 }
 0x25b   : > { %v2022_v51 = vadd.f32 %v1977_v62, %v1850_v10  ;;  %v2344_v49 = vmax.f32 %v2316_v52, 0.0 }
 0x25c   : > { %v1851_v19 = vadd.f32 %v1808_v23, %v1679_v20 }
 0x25d   : > { %v2194_v33 = vadd.f32 %v2149_v3, %v2022_v51 }
 0x25f   : > { %v2285_v47 = vmul.f32 %v4215_v46, %v2194_v33 }
 0x261   : > { %v2317_v15 = vadd.f32 %v4221_v42, %v2285_v47  ;;  %v1638_v56 = vpop.f32.mrf.mxu1  ;;  %v2154_v32 = vpop.f32.mrf.mxu0 }
 0x262   : > { %v1980_v28 = vpop.f32.mrf.mxu3  ;;  %v1680_v31 = vadd.f32 %v1638_v56, %v4165_v38  ;;  %v1818_v16 = vpop.f32.mrf.mxu2 }
 0x263   : > { %v2345_v39 = vmax.f32 %v2317_v15, 0.0  ;;  %v2023_v60 = vadd.f32 %v1980_v28, %v1851_v19 }
 0x264   : > { %v1852_v27 = vadd.f32 %v1810_v9, %v1680_v31 }
 0x265   : > { %v3148_v53 = vpack.c.bf16 %v2345_v39, %v2344_v49  ;;  %v2195_v22 = vadd.f32 %v2152_v2, %v2023_v60 }
 0x267   : > { %3182 = vst [vmem:[%s4236_s7 + $0x40] sm:$0xff] %v3148_v53   ;;  %v2286_v0 = vmul.f32 %v4215_v46, %v2195_v22 }
 0x269   : > { %v1641_v4 = vpop.f32.mrf.mxu1  ;;  %v2157_v59 = vpop.f32.mrf.mxu0  ;;  %v2318_v48 = vadd.f32 %v4221_v42, %v2286_v0 }
 0x26a   : > { %v1982_v29 = vpop.f32.mrf.mxu3  ;;  %v1681_v17 = vadd.f32 %v1641_v4, %v4172_v44  ;;  %v1820_v10 = vpop.f32.mrf.mxu2 }
 0x26b   : > { %v2024_v18 = vadd.f32 %v1982_v29, %v1852_v27  ;;  %v2346_v21 = vmax.f32 %v2318_v48, 0.0 }
 0x26c   : > { %v1853_v6 = vadd.f32 %v1813_v57, %v1681_v17 }
 0x26d   : > { %v2196_v1 = vadd.f32 %v2154_v32, %v2024_v18 }
 0x26f   : > { %v2287_v25 = vmul.f32 %v4215_v46, %v2196_v1 }
 0x271   : > { %v2319_v38 = vadd.f32 %v4221_v42, %v2287_v25  ;;  %v1643_v23 = vpop.f32.mrf.mxu1  ;;  %v2159_v43 = vpop.f32.mrf.mxu0 }
 0x272   : > { %v1985_v37 = vpop.f32.mrf.mxu3  ;;  %v1682_v45 = vadd.f32 %v1643_v23, %v4175_v35  ;;  %v1823_v19 = vpop.f32.mrf.mxu2 }
 0x273   : > { %v2347_v24 = vmax.f32 %v2319_v38, 0.0  ;;  %v2025_v26 = vadd.f32 %v1985_v37, %v1853_v6 }
 0x274   : > { %v1854_v44 = vadd.f32 %v1815_v7, %v1682_v45 }
 0x275   : > { %v3153_v61 = vpack.c.bf16 %v2347_v24, %v2346_v21  ;;  %v2197_v8 = vadd.f32 %v2157_v59, %v2025_v26 }
 0x277   : > { %3183 = vst [vmem:[%s4236_s7 + $0x48] sm:$0xff] %v3153_v61   ;;  %v2288_v12 = vmul.f32 %v4215_v46, %v2197_v8 }
 0x279   : > { %v1646_v14 = vpop.f32.mrf.mxu1  ;;  %v2162_v3 = vpop.f32.mrf.mxu0  ;;  %v2320_v36 = vadd.f32 %v4221_v42, %v2288_v12 }
 0x27a   : > { %v1987_v41 = vpop.f32.mrf.mxu3  ;;  %v1683_v30 = vadd.f32 %v1646_v14, %v4182_v34  ;;  %v1825_v59 = vpop.f32.mrf.mxu2 }
 0x27b   : > { %v2026_v50 = vadd.f32 %v1987_v41, %v1854_v44  ;;  %v2348_v51 = vmax.f32 %v2320_v36, 0.0 }
 0x27c   : > { %v1855_v62 = vadd.f32 %v1818_v16, %v1683_v30 }
 0x27d   : > { %v2198_v55 = vadd.f32 %v2159_v43, %v2026_v50 }
 0x27f   : > { %v2289_v9 = vmul.f32 %v4215_v46, %v2198_v55 }
 0x281   : > { %v2321_v35 = vadd.f32 %v4221_v42, %v2289_v9  ;;  %v1648_v33 = vpop.f32.mrf.mxu1  ;;  %v2164_v20 = vpop.f32.mrf.mxu0 }
 0x282   : > { %v1990_v13 = vpop.f32.mrf.mxu3  ;;  %v1684_v47 = vadd.f32 %v1648_v33, %v4185_v40  ;;  %v1828_v26 = vpop.f32.mrf.mxu2 }
 0x283   : > { %v2349_v5 = vmax.f32 %v2321_v35, 0.0  ;;  %v2027_v2 = vadd.f32 %v1990_v13, %v1855_v62 }
 0x284   : > { %v1856_v34 = vadd.f32 %v1820_v10, %v1684_v47 }
 0x285   : > { %v3158_v52 = vpack.c.bf16 %v2349_v5, %v2348_v51  ;;  %v2199_v15 = vadd.f32 %v2162_v3, %v2027_v2 }
 0x287   : > { %3184 = vst [vmem:[%s4236_s7 + $0x50] sm:$0xff] %v3158_v52   ;;  %v2290_v57 = vmul.f32 %v4215_v46, %v2199_v15 }
 0x289   : > { %v1651_v39 = vpop.f32.mrf.mxu1  ;;  %v2167_v32 = vpop.f32.mrf.mxu0  ;;  %v2322_v53 = vadd.f32 %v4221_v42, %v2290_v57 }
 0x28a   : > { %v1992_v28 = vpop.f32.mrf.mxu3  ;;  %v1685_v56 = vadd.f32 %v1651_v39, %v4192_v11  ;;  %v1830_v3 = vpop.f32.mrf.mxu2 }
 0x28b   : > { %v2028_v49 = vadd.f32 %v1992_v28, %v1856_v34  ;;  %v2350_v29 = vmax.f32 %v2322_v53, 0.0 }
 0x28c   : > { %v1857_v22 = vadd.f32 %v1823_v19, %v1685_v56 }
 0x28d   : > { %v2200_v60 = vadd.f32 %v2164_v20, %v2028_v49 }
 0x28f   : > { %v2291_v31 = vmul.f32 %v4215_v46, %v2200_v60 }
 0x291   : > { %v2323_v40 = vadd.f32 %v4221_v42, %v2291_v31  ;;  %v1653_v4 = vpop.f32.mrf.mxu1  ;;  %v2169_v11 = vpop.f32.mrf.mxu0 }
 0x292   : > { %v1995_v27 = vpop.f32.mrf.mxu3  ;;  %v1686_v1 = vadd.f32 %v1653_v4, %v4195_v63 }
 0x293   : > { %v2351_v0 = vmax.f32 %v2323_v40, 0.0  ;;  %v2029_v18 = vadd.f32 %v1995_v27, %v1857_v22 }
 0x294   : > { %v1858_v48 = vadd.f32 %v1825_v59, %v1686_v1 }
 0x295   : > { %v3163_v7 = vpack.c.bf16 %v2351_v0, %v2350_v29  ;;  %v2201_v17 = vadd.f32 %v2167_v32, %v2029_v18 }
 0x297   : > { %3185 = vst [vmem:[%s4236_s7 + $0x58] sm:$0xff] %v3163_v7   ;;  %v2292_v38 = vmul.f32 %v4215_v46, %v2201_v17 }
 0x299   : > { %v1656_v37 = vpop.f32.mrf.mxu1  ;;  %v2324_v23 = vadd.f32 %v4221_v42, %v2292_v38  ;;  %v2172_v45 = vpop.f32.mrf.mxu0 }
 0x29a   : > { %v1997_v25 = vpop.f32.mrf.mxu3  ;;  %v1687_v24 = vadd.f32 %v1656_v37, %v4202_v58 }
 0x29b   : > { %v2030_v6 = vadd.f32 %v1997_v25, %v1858_v48  ;;  %v2352_v8 = vmax.f32 %v2324_v23, 0.0 }
 0x29c   : > { %v1859_v61 = vadd.f32 %v1828_v26, %v1687_v24 }
 0x29d   : > { %v2202_v21 = vadd.f32 %v2169_v11, %v2030_v6 }
 0x29f   : > { %v2293_v43 = vmul.f32 %v4215_v46, %v2202_v21 }
 0x2a1   : > { %v2325_v63 = vadd.f32 %v4221_v42, %v2293_v43  ;;  %v1658_v12 = vpop.f32.mrf.mxu1  ;;  %v2174_v10 = vpop.f32.mrf.mxu0 }
 0x2a2   : > { %v2000_v16 = vpop.f32.mrf.mxu3  ;;  %v1688_v14 = vadd.f32 %v1658_v12, %v4205_v54 }
 0x2a3   : > { %v2353_v44 = vmax.f32 %v2325_v63, 0.0  ;;  %v2031_v41 = vadd.f32 %v2000_v16, %v1859_v61 }
 0x2a4   : > { %v1860_v55 = vadd.f32 %v1830_v3, %v1688_v14 }
 0x2a5   : > { %v3168_v50 = vpack.c.bf16 %v2353_v44, %v2352_v8  ;;  %v2203_v58 = vadd.f32 %v2172_v45, %v2031_v41 }
 0x2a7   : > { %3186 = vst [vmem:[%s4236_s7 + $0x60] sm:$0xff] %v3168_v50   ;;  %v2294_v36 = vmul.f32 %v4215_v46, %v2203_v58 }
 0x2a9   : > { %v2326_v62 = vadd.f32 %v4221_v42, %v2294_v36 }
 0x2aa   : > { %v2002_v30 = vpop.f32.mrf.mxu3 }
 0x2ab   : > { %v2032_v9 = vadd.f32 %v2002_v30, %v1860_v55  ;;  %v2354_v5 = vmax.f32 %v2326_v62, 0.0 }
 0x2ad   : > { %v2204_v35 = vadd.f32 %v2174_v10, %v2032_v9 }
 0x2af   : > { %v2295_v13 = vmul.f32 %v4215_v46, %v2204_v35 }
 0x2b1   : > { %v2327_v51 = vadd.f32 %v4221_v42, %v2295_v13 }
 0x2b3   : > { %v2355_v2 = vmax.f32 %v2327_v51, 0.0 }
 0x2b5   : > { %v3173_v54 = vpack.c.bf16 %v2355_v2, %v2354_v5 }
 0x2b7   : > { %3187 = vst [vmem:[%s4236_s7 + $0x68] sm:$0xff] %v3173_v54  }
 0x2b8 PF: > { %s14_s17 = sadd.s32 1, %s3260_s17   ;;  %s4446_s15 = smov %s3256_s16 }
 0x2b9   : > { %p11_p5 = scmp.ge.s32.totalorder %s14_s17, 4   ;;  %s4447_s16 = smov %s4449_s18 }
 0x2bb   :  { %13 = sbr.rel (!%p11_p5) target bundleno = 2 (0x2), region = 91 }

</bundles_post_ra>
